<compile_context>
chip_gen: v5e
topology: v5e:2x2
jax: 0.10.0
libtpu: 0.0.40
codegen_flags: <defaults>
</compile_context>

<pallas_src>
import functools
import math

import jax
import jax.numpy as jnp
from jax import lax
from jax.experimental import pallas as pl
from jax.experimental.pallas import tpu as pltpu


def _geglu_kernel(x_ref, w_ref, b_ref, o_ref, acc_ref, *, tn):
    k = pl.program_id(2)

    @pl.when(k == 0)
    def _():
        # Fold the bias into the accumulator init (removes two epilogue adds).
        acc_ref[...] = jnp.broadcast_to(b_ref[...], acc_ref.shape)

    # Single fused matmul: columns [0:tn) are the value half, [tn:2tn) the
    # gate half of this output tile. bf16 inputs, f32 accumulation on MXU.
    acc_ref[...] += jnp.dot(x_ref[...], w_ref[...],
                            preferred_element_type=jnp.float32)

    @pl.when(k == pl.num_programs(2) - 1)
    def _():
        acc = acc_ref[...]
        val = acc[:, :tn]
        gate = acc[:, tn:]
        # Exact (erf) GELU in f32 -- matches default F.gelu (approximate='none').
        inv_sqrt2 = jnp.float32(1.0 / math.sqrt(2.0))
        gelu_gate = 0.5 * gate * (1.0 + lax.erf(gate * inv_sqrt2))
        o_ref[...] = (val * gelu_gate).astype(o_ref.dtype)


def _pick_tile(dim, target, granularity):
    """Largest t <= min(target, dim) with dim % t == 0, preferring multiples of
    `granularity` (lane/sublane alignment). Falls back to the largest divisor."""
    target = max(1, min(target, dim))
    best = None
    for t in range(target, 0, -1):
        if dim % t == 0:
            if t % granularity == 0 or t == dim:
                return t
            if best is None:
                best = t
    return best if best is not None else dim


def geglu_pallas(x, w, b, *, tm=256, tn=512, tk=512,
                 matmul_dtype=jnp.bfloat16):
    """x: (..., dim_in); w: (dim_out*2, dim_in) PyTorch layout; b: (dim_out*2,)."""
    orig_shape = x.shape
    dim_in = orig_shape[-1]
    dim_out = w.shape[0] // 2

    x2d = x.reshape(-1, dim_in)
    M, K = x2d.shape
    N = dim_out

    # Shape-aware tile selection (keeps lane dims 128-aligned where possible).
    tm = _pick_tile(M, tm, 8)
    tn = _pick_tile(N, tn, 128)
    tk = _pick_tile(K, tk, 128)
    # TODO(synk): irregular (non 8/128-divisible) M/N/K would need cdiv grids +
    # masking; typical transformer shapes and the tests below divide cleanly.

    n_jt = N // tn

    # Repack the weight so each (tk, 2*tn) block j is [val_tile_j | gate_tile_j].
    wt = w.T                                         # (K, 2N): [:, :N]=val, [:, N:]=gate
    w_comb = (wt.reshape(K, 2, n_jt, tn)
                .transpose(0, 2, 1, 3)
                .reshape(K, 2 * N))
    b_comb = (b.reshape(2, n_jt, tn)
               .transpose(1, 0, 2)
               .reshape(1, 2 * N)
               .astype(jnp.float32))

    if matmul_dtype is not None:
        x2d = x2d.astype(matmul_dtype)
        w_comb = w_comb.astype(matmul_dtype)

    grid = (M // tm, N // tn, K // tk)

    kernel = functools.partial(_geglu_kernel, tn=tn)

    out = pl.pallas_call(
        kernel,
        out_shape=jax.ShapeDtypeStruct((M, N), x.dtype),
        grid_spec=pltpu.PrefetchScalarGridSpec(
            num_scalar_prefetch=0,
            grid=grid,
            in_specs=[
                pl.BlockSpec((tm, tk), lambda i, j, k: (i, k)),       # x
                pl.BlockSpec((tk, 2 * tn), lambda i, j, k: (k, j)),   # [Wv|Wg]
                pl.BlockSpec((1, 2 * tn), lambda i, j, k: (0, j)),    # [bv|bg]
            ],
            out_specs=pl.BlockSpec((tm, tn), lambda i, j, k: (i, j)),
            scratch_shapes=[
                pltpu.VMEM((tm, 2 * tn), jnp.float32),                # fused acc
            ],
        ),
        compiler_params=pltpu.CompilerParams(
            dimension_semantics=("parallel", "parallel", "arbitrary"),
            vmem_limit_bytes=48 * 1024 * 1024),
    )(x2d, w_comb, b_comb)

    return out.reshape(*orig_shape[:-1], dim_out)


def geglu_reference(x, w, b, matmul_dtype=None):
    """Pure-JAX reference. If matmul_dtype is given, the matmul inputs are cast
    (matching the kernel's bf16 MXU path) with f32 accumulation."""
    if matmul_dtype is not None:
        y = jnp.dot(x.astype(matmul_dtype), w.T.astype(matmul_dtype),
                    preferred_element_type=jnp.float32) + b.astype(jnp.float32)
    else:
        y = x @ w.T + b
    dim_out = w.shape[0] // 2
    val, gate = y[..., :dim_out], y[..., dim_out:]
    return (val * jax.nn.gelu(gate, approximate=False)).astype(x.dtype)


def _make_inputs(key, batch, seq, dim_in, dim_out):
    kx, kw, kb = jax.random.split(key, 3)
    x = jax.random.normal(kx, (batch, seq, dim_in), dtype=jnp.float32)
    # nn.Linear(dim_in, dim_out*2): weight (2*dim_out, dim_in), bias (2*dim_out,)
    bound = 1.0 / math.sqrt(dim_in)
    w = jax.random.uniform(kw, (2 * dim_out, dim_in), jnp.float32, -bound, bound)
    b = jax.random.uniform(kb, (2 * dim_out,), jnp.float32, -bound, bound)
    return x, w, b


def _check(out, x, w, b, dim_out):
    ref_bf16 = geglu_reference(x, w, b, matmul_dtype=jnp.bfloat16)
    ref_f32 = geglu_reference(x, w, b)
    assert out.shape == ref_f32.shape
    # Tight check against a reference using the same bf16-input / f32-acc matmul.
    assert jnp.allclose(out, ref_bf16, atol=1e-4, rtol=1e-4), (
        f"bf16-ref max abs err {jnp.max(jnp.abs(out - ref_bf16))}")
    # Loose sanity check against the full-f32 reference (bf16 input rounding).
    assert jnp.allclose(out, ref_f32, atol=3e-2, rtol=3e-2), (
        f"f32-ref max abs err {jnp.max(jnp.abs(out - ref_f32))}")


if __name__ == "__main__":
    key = jax.random.PRNGKey(0)
    k1, k2 = jax.random.split(key)

    # Case 1: GEGLU inside a transformer MLP block (small shapes).
    batch, seq, dim_in, dim_out = 2, 64, 256, 128
    x, w, b = _make_inputs(k1, batch, seq, dim_in, dim_out)
    out = jax.block_until_ready(geglu_pallas(x, w, b))
    assert out.shape == (batch, seq, dim_out)
    _check(out, x, w, b, dim_out)

    # Case 2: exercises multiple output (j) tiles and the interleaved weight
    # repacking (n_jt > 1).
    batch2, seq2, dim_in2, dim_out2 = 2, 32, 128, 256
    x2, w2, b2 = _make_inputs(k2, batch2, seq2, dim_in2, dim_out2)
    out2 = jax.block_until_ready(
        geglu_pallas(x2, w2, b2, tm=64, tn=128, tk=128))
    assert out2.shape == (batch2, seq2, dim_out2)
    _check(out2, x2, w2, b2, dim_out2)

    print("KERNEL_OK")
</pallas_src>

<mosaic_0001>
module attributes {stable_mosaic.version = 11 : i64} {
  func.func @_geglu_kernel(%arg0: i32, %arg1: i32, %arg2: i32, %arg3: memref<128x256xbf16, #tpu.memory_space<vmem>>, %arg4: memref<256x256xbf16, #tpu.memory_space<vmem>>, %arg5: memref<1x256xf32, #tpu.memory_space<vmem>>, %arg6: memref<128x128xf32, #tpu.memory_space<vmem>>, %arg7: memref<128x256xf32, #tpu.memory_space<vmem>>) attributes {dimension_semantics = [#tpu.dimension_semantics<parallel>, #tpu.dimension_semantics<parallel>, #tpu.dimension_semantics<arbitrary>], iteration_bounds = array<i64: 1, 1, 1>, scalar_prefetch = 0 : i64, scratch_operands = 1 : i64, tpu.core_type = #tpu.core_type<tc>, window_params = [{transform_indices = @transform_0, window_bounds = array<i64: 128, 256>}, {transform_indices = @transform_1, window_bounds = array<i64: 256, 256>}, {transform_indices = @transform_2, window_bounds = array<i64: 1, 256>}, {transform_indices = @transform_3, window_bounds = array<i64: 128, 128>}]} {
    %c0_i32 = arith.constant 0 : i32
    %0 = arith.cmpi eq, %arg2, %c0_i32 : i32
    %1 = arith.extui %0 : i1 to i32
    %c0_i32_0 = arith.constant 0 : i32
    %2 = arith.cmpi ne, %1, %c0_i32_0 : i32
    scf.if %2 {
      %c0_10 = arith.constant 0 : index
      %c0_11 = arith.constant 0 : index
      %12 = vector.load %arg5[%c0_10, %c0_11] : memref<1x256xf32, #tpu.memory_space<vmem>>, vector<1x256xf32>
      %13 = vector.shape_cast %12 : vector<1x256xf32> to vector<1x256xf32>
      %14 = vector.broadcast %13 : vector<1x256xf32> to vector<128x256xf32>
      %c0_12 = arith.constant 0 : index
      %c0_13 = arith.constant 0 : index
      %15 = vector.load %arg7[%c0_12, %c0_13] : memref<128x256xf32, #tpu.memory_space<vmem>>, vector<128x256xf32>
      tpu.vector_store %arg7[%c0_12, %c0_13], %14 {strides = array<i32>} : memref<128x256xf32, #tpu.memory_space<vmem>>, vector<128x256xf32>,
    } else {
    }
    %c0 = arith.constant 0 : index
    %c0_1 = arith.constant 0 : index
    %3 = vector.load %arg7[%c0, %c0_1] : memref<128x256xf32, #tpu.memory_space<vmem>>, vector<128x256xf32>
    %c0_2 = arith.constant 0 : index
    %c0_3 = arith.constant 0 : index
    %4 = vector.load %arg3[%c0_2, %c0_3] : memref<128x256xbf16, #tpu.memory_space<vmem>>, vector<128x256xbf16>
    %c0_4 = arith.constant 0 : index
    %c0_5 = arith.constant 0 : index
    %5 = vector.load %arg4[%c0_4, %c0_5] : memref<256x256xbf16, #tpu.memory_space<vmem>>, vector<256x256xbf16>
    %cst = arith.constant dense<0.000000e+00> : vector<128x256xf32>
    %6 = tpu.matmul %4, %5, %cst {dimension_numbers = #tpu.dot_dimension_numbers<[1], [0], [0], [1], [0, 0, 1, 1], [], []>} : vector<128x256xbf16>, vector<256x256xbf16>, vector<128x256xf32> -> vector<128x256xf32>
    %7 = arith.addf %3, %6 : vector<128x256xf32>
    %c0_6 = arith.constant 0 : index
    %c0_7 = arith.constant 0 : index
    %8 = vector.load %arg7[%c0_6, %c0_7] : memref<128x256xf32, #tpu.memory_space<vmem>>, vector<128x256xf32>
    tpu.vector_store %arg7[%c0_6, %c0_7], %7 {strides = array<i32>} : memref<128x256xf32, #tpu.memory_space<vmem>>, vector<128x256xf32>,
    %c0_i32_8 = arith.constant 0 : i32
    %9 = arith.cmpi eq, %arg2, %c0_i32_8 : i32
    %10 = arith.extui %9 : i1 to i32
    %c0_i32_9 = arith.constant 0 : i32
    %11 = arith.cmpi ne, %10, %c0_i32_9 : i32
    scf.if %11 {
      %c0_10 = arith.constant 0 : index
      %c0_11 = arith.constant 0 : index
      %12 = vector.load %arg7[%c0_10, %c0_11] : memref<128x256xf32, #tpu.memory_space<vmem>>, vector<128x256xf32>
      %13 = vector.extract_strided_slice %12 {offsets = [0, 0], sizes = [128, 128], strides = [1, 1]} : vector<128x256xf32> to vector<128x128xf32>
      %14 = vector.extract_strided_slice %12 {offsets = [0, 128], sizes = [128, 128], strides = [1, 1]} : vector<128x256xf32> to vector<128x128xf32>
      %cst_12 = arith.constant 5.000000e-01 : f32
      %15 = vector.broadcast %cst_12 : f32 to vector<128x128xf32>
      %16 = arith.mulf %15, %14 : vector<128x128xf32>
      %cst_13 = arith.constant 0.707106769 : f32
      %17 = vector.broadcast %cst_13 : f32 to vector<128x128xf32>
      %18 = arith.mulf %14, %17 : vector<128x128xf32>
      %19 = math.erf %18 : vector<128x128xf32>
      %cst_14 = arith.constant 1.000000e+00 : f32
      %20 = vector.broadcast %cst_14 : f32 to vector<128x128xf32>
      %21 = arith.addf %20, %19 : vector<128x128xf32>
      %22 = arith.mulf %16, %21 : vector<128x128xf32>
      %23 = arith.mulf %13, %22 : vector<128x128xf32>
      %c0_15 = arith.constant 0 : index
      %c0_16 = arith.constant 0 : index
      %24 = vector.load %arg6[%c0_15, %c0_16] : memref<128x128xf32, #tpu.memory_space<vmem>>, vector<128x128xf32>
      tpu.vector_store %arg6[%c0_15, %c0_16], %23 {strides = array<i32>} : memref<128x128xf32, #tpu.memory_space<vmem>>, vector<128x128xf32>,
    } else {
    }
    return
  }
  func.func @transform_0(%arg0: i32, %arg1: i32, %arg2: i32) -> (i32, i32) {
    %c0_i32 = arith.constant 0 : i32
    return %arg0, %arg2 : i32, i32
  }
  func.func @transform_1(%arg0: i32, %arg1: i32, %arg2: i32) -> (i32, i32) {
    %c0_i32 = arith.constant 0 : i32
    return %arg2, %arg1 : i32, i32
  }
  func.func @transform_2(%arg0: i32, %arg1: i32, %arg2: i32) -> (i32, i32) {
    %c0_i32 = arith.constant 0 : i32
    %c0_i32_0 = arith.constant 0 : i32
    return %c0_i32, %arg1 : i32, i32
  }
  func.func @transform_3(%arg0: i32, %arg1: i32, %arg2: i32) -> (i32, i32) {
    %c0_i32 = arith.constant 0 : i32
    return %arg0, %arg1 : i32, i32
  }
}

</mosaic_0001>

<bundles_post_ra>
// kernel: tpu_custom_call.1
= control target key start
LH: loop header
LB: loop body
LE: loop exit
PB: predicated region body
PF: predicated region fallthrough
CT: control target
= control target key end

     0   :  { %8 = vsyncpa [#allocation4], 0  ;;  %s2648_s0 = inlined_call_operand.hbm [shape: bf16[128,256], index: 0, kind: input, shape index: {}]   ;;  %s2649_s1 = inlined_call_operand.hbm [shape: bf16[256,256], index: 1, kind: input, shape index: {}]   ;;  %s2650_s2 = inlined_call_operand.hbm [shape: f32[1,256], index: 2, kind: input, shape index: {}]   ;;  %s2651_s3 = inlined_call_operand.hbm [shape: f32[128,128], index: 3, kind: output, shape index: {}]  }
   0x1   :  { %9 = vsyncpa [#allocation7], 0 }
   0x2   :  { %10 = vsyncpa [#allocation5], 0  ;;  %s28_s14 = sshll.u32 %s2649_s1, 4  ;;  %s1869_s15 = smov [#allocation6]   ;;  %s29_s14 = int_to_ptr.hbm [resolvable:$true] %s28_s14 }
   0x3   :  { %s30_s16 = sshll.u32 %s1869_s15, 4  ;;  %s15_s19 = sshll.u32 %s2648_s0, 4  ;;  %s31_s16 = int_to_ptr.vmem [resolvable:$true] %s30_s16  ;;  %s16_s19 = int_to_ptr.hbm [resolvable:$true] %s15_s19 }
   0x4   :  { %s1870_s20 = smov 128   ;;  %s1871_s21 = smov 8  }
   0x5   :  { %36 = dma.hbm_to_vmem [thread:$0]  %s29_s14, 4096, %s31_s16, [#allocation7], %s1870_s20, %s1870_s20, %s1871_s21  }
   0x6   :  { %s1872_s22 = smov [#allocation3]   ;;  %s42_s1 = sshll.u32 %s2650_s2, 4  ;;  %s43_s1 = int_to_ptr.hbm [resolvable:$true] %s42_s1 }
   0x7   :  { %s17_s23 = sshll.u32 %s1872_s22, 4  ;;  %s1873_s0 = smov [#allocation8]   ;;  %s18_s23 = int_to_ptr.vmem [resolvable:$true] %s17_s23 }
   0x8   :  { %23 = dma.hbm_to_vmem [thread:$0]  %s16_s19, 2048, %s18_s23, [#allocation4], %s1870_s20, %s1870_s20, %s1871_s21  }
   0x9   :  { %s44_s26 = sshll.u32 %s1873_s0, 4  ;;  %s45_s26 = int_to_ptr.vmem [resolvable:$true] %s44_s26 }
   0xa   :  { %47 = dma.hbm_to_vmem [thread:$0]  %s43_s1, 32, %s45_s26, [#allocation7]  }
   0xb   :  { %1863 = dma.done.wait [#allocation4], 2048  }
   0xc   :  { %1864 = vsyncadd [#allocation4], 4294965248 }
   0xd   :  { %1865 = dma.done.wait [#allocation7], 4128  }
   0xe   :  { %1866 = vsyncadd [#allocation7], 4294963168  ;;  %v1711_v0 = vld [vmem:[#allocation6 + $0x74] sm:$0xf]  ;;  %v1597_v1 = vld [vmem:[#allocation6 + $0x78] sm:$0xf0] }
   0xf   :  { %v1727_v2 = vld [vmem:[#allocation6 + $0xf4] sm:$0xf]  ;;  %v1600_v3 = vor.u32 %v1711_v0, %v1597_v1  ;;  %v1661_v4 = vld [vmem:[#allocation6 + $0xf8] sm:$0xf0]  ;;  %v1709_v5 = vld [vmem:[#allocation6 + $0x64] sm:$0xf] }
  0x10   :  { %v1589_v6 = vld [vmem:[#allocation6 + $0x68] sm:$0xf0]  ;;  %v1664_v7 = vor.u32 %v1727_v2, %v1661_v4  ;;  %v1725_v8 = vld [vmem:[#allocation6 + $0xe4] sm:$0xf]  ;;  %v1707_v12 = vld [vmem:[#allocation6 + $0x54] sm:$0xf] }
  0x11   :  { %v1653_v9 = vld [vmem:[#allocation6 + $0xe8] sm:$0xf0]  ;;  %520 = vmatpush.bf16.msra.mxu2 %v1600_v3  ;;  %v1592_v10 = vor.u32 %v1709_v5, %v1589_v6  ;;  %v1581_v13 = vld [vmem:[#allocation6 + $0x58] sm:$0xf0]  ;;  %v1723_v14 = vld [vmem:[#allocation6 + $0xd4] sm:$0xf] }
  0x12   :  { %569 = vmatpush.bf16.msra.mxu3 %v1664_v7  ;;  %v1656_v11 = vor.u32 %v1725_v8, %v1653_v9  ;;  %v1645_v15 = vld [vmem:[#allocation6 + $0xd8] sm:$0xf0]  ;;  %v1584_v16 = vor.u32 %v1707_v12, %v1581_v13  ;;  %v1705_v18 = vld [vmem:[#allocation6 + $0x44] sm:$0xf]  ;;  %v1573_v19 = vld [vmem:[#allocation6 + $0x48] sm:$0xf0] }
  0x13   :  { %v1648_v17 = vor.u32 %v1723_v14, %v1645_v15  ;;  %v1721_v20 = vld [vmem:[#allocation6 + $0xc4] sm:$0xf]  ;;  %v1637_v21 = vld [vmem:[#allocation6 + $0xc8] sm:$0xf0]  ;;  %v1576_v22 = vor.u32 %v1705_v18, %v1573_v19  ;;  %v1703_v24 = vld [vmem:[#allocation6 + $0x34] sm:$0xf] }
  0x14   :  { %v1640_v23 = vor.u32 %v1721_v20, %v1637_v21  ;;  %v1565_v25 = vld [vmem:[#allocation6 + $0x38] sm:$0xf0]  ;;  %v1719_v26 = vld [vmem:[#allocation6 + $0xb4] sm:$0xf]  ;;  %v1701_v30 = vld [vmem:[#allocation6 + $0x24] sm:$0xf] }
  0x15   :  { %521 = vmatpush.bf16.msra.mxu2 %v1592_v10  ;;  %v1629_v27 = vld [vmem:[#allocation6 + $0xb8] sm:$0xf0]  ;;  %v1568_v28 = vor.u32 %v1703_v24, %v1565_v25  ;;  %v1557_v31 = vld [vmem:[#allocation6 + $0x28] sm:$0xf0]  ;;  %v1717_v32 = vld [vmem:[#allocation6 + $0xa4] sm:$0xf] }
  0x16   :  { %570 = vmatpush.bf16.msra.mxu3 %v1656_v11  ;;  %v1632_v29 = vor.u32 %v1719_v26, %v1629_v27  ;;  %v1621_v33 = vld [vmem:[#allocation6 + $0xa8] sm:$0xf0]  ;;  %v1699_v34 = vld [vmem:[#allocation6 + $0x14] sm:$0xf]  ;;  %v1595_v35 = vld [vmem:[#allocation6 + $0x70] sm:$0xf]  ;;  %v1560_v38 = vor.u32 %v1701_v30, %v1557_v31 }
  0x17   :  { %v1712_v36 = vld [vmem:[#allocation6 + $0x74] sm:$0xf0]  ;;  %v1659_v37 = vld [vmem:[#allocation6 + $0xf0] sm:$0xf]  ;;  %v1587_v41 = vld [vmem:[#allocation6 + $0x60] sm:$0xf]  ;;  %v1624_v43 = vor.u32 %v1717_v32, %v1621_v33 }
  0x18   :  { %v1596_v39 = vor.u32 %v1712_v36, %v1595_v35  ;;  %v1728_v40 = vld [vmem:[#allocation6 + $0xf4] sm:$0xf0]  ;;  %v1710_v42 = vld [vmem:[#allocation6 + $0x64] sm:$0xf0]  ;;  %v1549_v44 = vld [vmem:[#allocation6 + $0x18] sm:$0xf0] }
  0x19   :  { %522 = vmatpush.bf16.msra.mxu2 %v1584_v16  ;;  %v1660_v45 = vor.u32 %v1728_v40, %v1659_v37  ;;  %v1651_v46 = vld [vmem:[#allocation6 + $0xe0] sm:$0xf]  ;;  %v1726_v47 = vld [vmem:[#allocation6 + $0xe4] sm:$0xf0]  ;;  %v1715_v48 = vld [vmem:[#allocation6 + $0x94] sm:$0xf]  ;;  %v1588_v50 = vor.u32 %v1710_v42, %v1587_v41  ;;  %v1552_v54 = vor.u32 %v1699_v34, %v1549_v44 }
  0x1a   :  { %571 = vmatpush.bf16.msra.mxu3 %v1648_v17  ;;  %v1613_v49 = vld [vmem:[#allocation6 + $0x98] sm:$0xf0]  ;;  %422 = vmatpush.bf16.msra.mxu0 %v1596_v39  ;;  %v1652_v51 = vor.u32 %v1726_v47, %v1651_v46  ;;  %v1579_v52 = vld [vmem:[#allocation6 + $0x50] sm:$0xf]  ;;  %v1708_v53 = vld [vmem:[#allocation6 + $0x54] sm:$0xf0] }
  0x1b   :  { %471 = vmatpush.bf16.msra.mxu1 %v1660_v45  ;;  %v1643_v55 = vld [vmem:[#allocation6 + $0xd0] sm:$0xf]  ;;  %v1724_v56 = vld [vmem:[#allocation6 + $0xd4] sm:$0xf0]  ;;  %v1616_v57 = vor.u32 %v1715_v48, %v1613_v49  ;;  %v1697_v58 = vld [vmem:[#allocation6 + $0x4] sm:$0xf]  ;;  %v1580_v62 = vor.u32 %v1708_v53, %v1579_v52 }
  0x1c   :  { %v1541_v59 = vld [vmem:[#allocation6 + $0x8] sm:$0xf0]  ;;  %v1713_v60 = vld [vmem:[#allocation6 + $0x84] sm:$0xf]  ;;  %v1475_v63 = vld [vmem:[#allocation3] sm:$0xf]  ;;  %v1644_v0 = vor.u32 %v1724_v56, %v1643_v55 }
  0x1d   :  { %523 = vmatpush.bf16.msra.mxu2 %v1576_v22  ;;  %v1605_v61 = vld [vmem:[#allocation6 + $0x88] sm:$0xf0]  ;;  %v1571_v1 = vld [vmem:[#allocation6 + $0x40] sm:$0xf]  ;;  %v1706_v2 = vld [vmem:[#allocation6 + $0x44] sm:$0xf0]  ;;  %v1544_v3 = vor.u32 %v1697_v58, %v1541_v59 }
  0x1e   :  { %572 = vmatpush.bf16.msra.mxu3 %v1640_v23  ;;  %423 = vmatpush.bf16.msra.mxu0 %v1588_v50  ;;  %v1682_v4 = vld [vmem:[#allocation3 + $0x4] sm:$0xf0]  ;;  %v1635_v5 = vld [vmem:[#allocation6 + $0xc0] sm:$0xf]  ;;  %v1608_v7 = vor.u32 %v1713_v60, %v1605_v61  ;;  %v1681_v8 = vld [vmem:[#allocation3 + $0x4] sm:$0xf]  ;;  %v1572_v10 = vor.u32 %v1706_v2, %v1571_v1 }
  0x1f   :  { %472 = vmatpush.bf16.msra.mxu1 %v1652_v51  ;;  %v1722_v6 = vld [vmem:[#allocation6 + $0xc4] sm:$0xf0]  ;;  %v1477_v9 = vld [vmem:[#allocation3 + $0x8] sm:$0xf0]  ;;  %v1476_v11 = vor.u32 %v1682_v4, %v1475_v63  ;;  %v1563_v14 = vld [vmem:[#allocation6 + $0x30] sm:$0xf] }
  0x20   :  { %v1636_v12 = vor.u32 %v1722_v6, %v1635_v5  ;;  %v1480_v13 = vor.u32 %v1681_v8, %v1477_v9  ;;  %v1704_v15 = vld [vmem:[#allocation6 + $0x34] sm:$0xf0]  ;;  %v1627_v16 = vld [vmem:[#allocation6 + $0xb0] sm:$0xf]  ;;  %v1555_v19 = vld [vmem:[#allocation6 + $0x20] sm:$0xf] }
  0x21   :  { %524 = vmatpush.bf16.msra.mxu2 %v1568_v28  ;;  %v1564_v17 = vor.u32 %v1704_v15, %v1563_v14  ;;  %v1720_v18 = vld [vmem:[#allocation6 + $0xb4] sm:$0xf0]  ;;  %v1702_v20 = vld [vmem:[#allocation6 + $0x24] sm:$0xf0]  ;;  %v1619_v22 = vld [vmem:[#allocation6 + $0xa0] sm:$0xf] }
  0x22   :  { %573 = vmatpush.bf16.msra.mxu3 %v1632_v29  ;;  %424 = vmatpush.bf16.msra.mxu0 %v1580_v62  ;;  %v1628_v21 = vor.u32 %v1720_v18, %v1627_v16  ;;  %v1718_v23 = vld [vmem:[#allocation6 + $0xa4] sm:$0xf0]  ;;  %v1556_v24 = vor.u32 %v1702_v20, %v1555_v19  ;;  %v1547_v26 = vld [vmem:[#allocation6 + $0x10] sm:$0xf]  ;;  %v1700_v27 = vld [vmem:[#allocation6 + $0x14] sm:$0xf0] }
  0x23   :  { %473 = vmatpush.bf16.msra.mxu1 %v1644_v0  ;;  %v1620_v25 = vor.u32 %v1718_v23, %v1619_v22  ;;  %v1611_v28 = vld [vmem:[#allocation6 + $0x90] sm:$0xf]  ;;  %v1716_v29 = vld [vmem:[#allocation6 + $0x94] sm:$0xf0]  ;;  %v1548_v30 = vor.u32 %v1700_v27, %v1547_v26  ;;  %v1539_v33 = vld [vmem:[#allocation6] sm:$0xf] }
  0x24   :  { %v1483_v31 = vld [vmem:[#allocation3 + $0x10] sm:$0xf]  ;;  %v1612_v32 = vor.u32 %v1716_v29, %v1611_v28  ;;  %v1698_v34 = vld [vmem:[#allocation6 + $0x4] sm:$0xf0]  ;;  %v1684_v35 = vld [vmem:[#allocation3 + $0x14] sm:$0xf0] }
  0x25   :  { %525 = vmatpush.bf16.msra.mxu2 %v1560_v38  ;;  %v1603_v36 = vld [vmem:[#allocation6 + $0x80] sm:$0xf]  ;;  %v1714_v37 = vld [vmem:[#allocation6 + $0x84] sm:$0xf0]  ;;  %v1683_v38 = vld [vmem:[#allocation3 + $0x14] sm:$0xf]  ;;  %v1540_v40 = vor.u32 %v1698_v34, %v1539_v33  ;;  %v1484_v41 = vor.u32 %v1684_v35, %v1483_v31 }
  0x26   :  { %574 = vmatpush.bf16.msra.mxu3 %v1624_v43  ;;  %425 = vmatpush.bf16.msra.mxu0 %v1572_v10  ;;  %v1485_v39 = vld [vmem:[#allocation3 + $0x18] sm:$0xf0]  ;;  %v1604_v42 = vor.u32 %v1714_v37, %v1603_v36  ;;  %v1491_v44 = vld [vmem:[#allocation3 + $0x20] sm:$0xf]  ;;  %v1686_v45 = vld [vmem:[#allocation3 + $0x24] sm:$0xf0] }
  0x27   :  { %474 = vmatpush.bf16.msra.mxu1 %v1636_v12  ;;  %v1488_v43 = vor.u32 %v1683_v38, %v1485_v39  ;;  %v1685_v46 = vld [vmem:[#allocation3 + $0x24] sm:$0xf]  ;;  %v1493_v47 = vld [vmem:[#allocation3 + $0x28] sm:$0xf0]  ;;  %v1492_v48 = vor.u32 %v1686_v45, %v1491_v44  ;;  %v1499_v50 = vld [vmem:[#allocation3 + $0x30] sm:$0xf] }
  0x28   :  { %v1496_v49 = vor.u32 %v1685_v46, %v1493_v47  ;;  %v1688_v51 = vld [vmem:[#allocation3 + $0x34] sm:$0xf0]  ;;  %v1687_v52 = vld [vmem:[#allocation3 + $0x34] sm:$0xf]  ;;  %v1501_v53 = vld [vmem:[#allocation3 + $0x38] sm:$0xf0] }
  0x29   :  { %526 = vmatpush.bf16.msra.mxu2 %v1552_v54  ;;  %v1500_v54 = vor.u32 %v1688_v51, %v1499_v50  ;;  %v1504_v55 = vor.u32 %v1687_v52, %v1501_v53  ;;  %v1507_v56 = vld [vmem:[#allocation3 + $0x40] sm:$0xf]  ;;  %v1689_v58 = vld [vmem:[#allocation3 + $0x44] sm:$0xf]  ;;  %v1509_v59 = vld [vmem:[#allocation3 + $0x48] sm:$0xf0] }
  0x2a   :  { %575 = vmatpush.bf16.msra.mxu3 %v1616_v57  ;;  %426 = vmatpush.bf16.msra.mxu0 %v1564_v17  ;;  %v1690_v57 = vld [vmem:[#allocation3 + $0x44] sm:$0xf0]  ;;  %v1512_v61 = vor.u32 %v1689_v58, %v1509_v59  ;;  %v1515_v62 = vld [vmem:[#allocation3 + $0x50] sm:$0xf]  ;;  %v1692_v63 = vld [vmem:[#allocation3 + $0x54] sm:$0xf0] }
  0x2b   :  { %475 = vmatpush.bf16.msra.mxu1 %v1628_v21  ;;  %v1508_v60 = vor.u32 %v1690_v57, %v1507_v56  ;;  %v1691_v0 = vld [vmem:[#allocation3 + $0x54] sm:$0xf]  ;;  %v1517_v1 = vld [vmem:[#allocation3 + $0x58] sm:$0xf0]  ;;  %v1516_v2 = vor.u32 %v1692_v63, %v1515_v62  ;;  %v1523_v4 = vld [vmem:[#allocation3 + $0x60] sm:$0xf] }
  0x2c   :  { %v1694_v5 = vld [vmem:[#allocation3 + $0x64] sm:$0xf0]  ;;  %v1693_v6 = vld [vmem:[#allocation3 + $0x64] sm:$0xf]  ;;  %v1531_v10 = vld [vmem:[#allocation3 + $0x70] sm:$0xf] }
  0x2d   :  { %527 = vmatpush.bf16.msra.mxu2 %v1544_v3  ;;  %v1520_v3 = vor.u32 %v1691_v0, %v1517_v1  ;;  %v1524_v8 = vor.u32 %v1694_v5, %v1523_v4  ;;  %v1695_v12 = vld [vmem:[#allocation3 + $0x74] sm:$0xf]  ;;  %v1910_v16 = vld [vmem:[#allocation8] sm:$0x3]  ;;  %s1874_s2 = smov [#allocation9]   ;;  %s1459_s30 = sshll.u32 %s2651_s3, 4  ;;  %s1460_s30 = int_to_ptr.hbm [resolvable:$true] %s1459_s30 }
  0x2e   :  { %576 = vmatpush.bf16.msra.mxu3 %v1608_v7  ;;  %427 = vmatpush.bf16.msra.mxu0 %v1556_v24  ;;  %v1525_v7 = vld [vmem:[#allocation3 + $0x68] sm:$0xf0]  ;;  %v1913_v18 = vperm.slane %v1910_v16, 1  ;;  %s1457_s27 = sshll.u32 %s1874_s2, 4  ;;  %s1458_s27 = int_to_ptr.vmem [resolvable:$true] %s1457_s27 }
  0x2f   :  { %476 = vmatpush.bf16.msra.mxu1 %v1620_v25  ;;  %v1528_v9 = vor.u32 %v1693_v6, %v1525_v7 }
  0x30   :  { %528 = vmatmul.bf16.vlgmr.msra.gmra.mxu2 %v1476_v11 }
  0x31   :  { %577 = vmatmul.bf16.vlgmr.msra.gmra.mxu3 %v1480_v13 }
  0x32   :  { %428 = vmatpush.bf16.msra.mxu0 %v1548_v30 }
  0x33   :  { %477 = vmatpush.bf16.msra.mxu1 %v1612_v32 }
  0x36   :  { %429 = vmatpush.bf16.msra.mxu0 %v1540_v40 }
  0x37   :  { %478 = vmatpush.bf16.msra.mxu1 %v1604_v42 }
  0x39   :  { %430 = vmatmul.bf16.vlgmr.msra.gmra.mxu0 %v1476_v11  ;;  %v1696_v11 = vld [vmem:[#allocation3 + $0x74] sm:$0xf0] }
  0x3a   :  { %479 = vmatmul.bf16.vlgmr.msra.gmra.mxu1 %v1480_v13  ;;  %v1533_v13 = vld [vmem:[#allocation3 + $0x78] sm:$0xf0]  ;;  %v1532_v14 = vor.u32 %v1696_v11, %v1531_v10 }
  0x3b   :  { %v1536_v15 = vor.u32 %v1695_v12, %v1533_v13 }
  0x40   :  { %533 = vmatmul.bf16.gmra.mxu2 %v1484_v41 }
  0x41   :  { %582 = vmatmul.bf16.gmra.mxu3 %v1488_v43 }
  0x49   :  { %435 = vmatmul.bf16.gmra.mxu0 %v1484_v41 }
  0x4a   :  { %484 = vmatmul.bf16.gmra.mxu1 %v1488_v43 }
  0x50   :  { %538 = vmatmul.bf16.gmra.mxu2 %v1492_v48 }
  0x51   :  { %587 = vmatmul.bf16.gmra.mxu3 %v1496_v49 }
  0x59   :  { %440 = vmatmul.bf16.gmra.mxu0 %v1492_v48 }
  0x5a   :  { %489 = vmatmul.bf16.gmra.mxu1 %v1496_v49 }
  0x60   :  { %543 = vmatmul.bf16.gmra.mxu2 %v1500_v54 }
  0x61   :  { %592 = vmatmul.bf16.gmra.mxu3 %v1504_v55 }
  0x69   :  { %445 = vmatmul.bf16.gmra.mxu0 %v1500_v54 }
  0x6a   :  { %494 = vmatmul.bf16.gmra.mxu1 %v1504_v55 }
  0x70   :  { %548 = vmatmul.bf16.gmra.mxu2 %v1508_v60 }
  0x71   :  { %597 = vmatmul.bf16.gmra.mxu3 %v1512_v61 }
  0x79   :  { %450 = vmatmul.bf16.gmra.mxu0 %v1508_v60 }
  0x7a   :  { %499 = vmatmul.bf16.gmra.mxu1 %v1512_v61 }
  0x80   :  { %553 = vmatmul.bf16.gmra.mxu2 %v1516_v2 }
  0x81   :  { %602 = vmatmul.bf16.gmra.mxu3 %v1520_v3 }
  0x89   :  { %455 = vmatmul.bf16.gmra.mxu0 %v1516_v2 }
  0x8a   :  { %504 = vmatmul.bf16.gmra.mxu1 %v1520_v3 }
  0x90   :  { %558 = vmatmul.bf16.gmra.mxu2 %v1524_v8 }
  0x91   :  { %607 = vmatmul.bf16.gmra.mxu3 %v1528_v9 }
  0x99   :  { %460 = vmatmul.bf16.gmra.mxu0 %v1524_v8 }
  0x9a   :  { %509 = vmatmul.bf16.gmra.mxu1 %v1528_v9 }
  0xa0   :  { %563 = vmatmul.bf16.gmra.mxu2 %v1532_v14 }
  0xa1   :  { %612 = vmatmul.bf16.gmra.mxu3 %v1536_v15 }
  0xa9   :  { %465 = vmatmul.bf16.gmra.mxu0 %v1532_v14 }
  0xaa   :  { %514 = vmatmul.bf16.gmra.mxu1 %v1536_v15 }
  0xb3   :  { %v529_v17 = vpop.f32.mrf.mxu2 }
  0xb4   :  { %v578_v19 = vpop.f32.mrf.mxu3 }
  0xb5   :  { %v579_v20 = vadd.f32 %v578_v19, %v529_v17 }
  0xb7   :  { %v1916_v21 = vadd.f32 %v579_v20, %v1913_v18 }
  0xb9   :  { %v1919_v22 = vmul.f32 0.70710677, %v1916_v21 }
  0xbb   :  { %v749_v23 = vmul.f32 %v1919_v22, %v1919_v22  ;;  %v531_v24 = vpop.f32.mrf.mxu2 }
  0xbc   :  { %v580_v25 = vpop.f32.mrf.mxu3 }
  0xbd   :  { %v750_v26 = vmin.f32 %v749_v23, 16.0  ;;  %v581_v27 = vadd.f32 %v580_v25, %v531_v24 }
  0xbf   :  { %v751_v28 = vmul.f32 2.1237322e-06, %v750_v26  ;;  %v762_v29 = vmul.f32 3.8918573e-05, %v750_v26  ;;  %v1924_v30 = vadd.f32 %v581_v27, %v1913_v18 }
  0xc1   :  { %v752_v31 = vadd.f32 0.00028619796, %v751_v28  ;;  %v763_v32 = vadd.f32 0.001143296, %v762_v29  ;;  %v1927_v33 = vmul.f32 0.70710677, %v1924_v30 }
  0xc3   :  { %v753_v34 = vmul.f32 %v752_v31, %v750_v26  ;;  %v764_v35 = vmul.f32 %v763_v32, %v750_v26  ;;  %v534_v36 = vpop.f32.mrf.mxu2  ;;  %v789_v37 = vmul.f32 %v1927_v33, %v1927_v33 }
  0xc4   :  { %v583_v38 = vpop.f32.mrf.mxu3 }
  0xc5   :  { %v754_v39 = vadd.f32 0.0036580483, %v753_v34  ;;  %v765_v40 = vadd.f32 0.014752088, %v764_v35  ;;  %v584_v41 = vadd.f32 %v583_v38, %v534_v36  ;;  %v1931_v42 = vmin.f32 %v789_v37, 16.0 }
  0xc6   :  { %v1968_v37 = vmul.f32 0.5, %v1916_v21 }
  0xc7   :  { %v755_v43 = vmul.f32 %v754_v39, %v750_v26  ;;  %v766_v44 = vmul.f32 %v765_v40, %v750_v26  ;;  %v1934_v45 = vadd.f32 %v584_v41, %v1913_v18  ;;  %v791_v46 = vmul.f32 2.1237322e-06, %v1931_v42 }
  0xc8   :  { %v802_v47 = vmul.f32 3.8918573e-05, %v1931_v42 }
  0xc9   :  { %v756_v48 = vadd.f32 0.05243302, %v755_v43  ;;  %v767_v49 = vadd.f32 0.112945676, %v766_v44  ;;  %v792_v50 = vadd.f32 0.00028619796, %v791_v46 }
  0xca   :  { %v803_v51 = vadd.f32 0.001143296, %v802_v47  ;;  %v1939_v52 = vmul.f32 0.70710677, %v1934_v45 }
  0xcb   :  { %v768_v53 = vmul.f32 %v767_v49, %v750_v26  ;;  %v536_v54 = vpop.f32.mrf.mxu2  ;;  %v757_v55 = vmul.f32 %v756_v48, %v750_v26  ;;  %v793_v56 = vmul.f32 %v792_v50, %v1931_v42  ;;  %v1975_v48 = vmul.f32 0.5, %v1924_v30 }
  0xcc   :  { %v804_v57 = vmul.f32 %v803_v51, %v1931_v42  ;;  %v829_v58 = vmul.f32 %v1939_v52, %v1939_v52  ;;  %v585_v59 = vpop.f32.mrf.mxu3 }
  0xcd   :  { %v769_v60 = vadd.f32 0.4994258, %v768_v53  ;;  %v586_v61 = vadd.f32 %v585_v59, %v536_v54  ;;  %v758_v2 = vadd.f32 0.18741608, %v757_v55  ;;  %v794_v3 = vadd.f32 0.0036580483, %v793_v56 }
  0xce   :  { %v805_v62 = vadd.f32 0.014752088, %v804_v57  ;;  %v1945_v63 = vmin.f32 %v829_v58, 16.0 }
  0xcf   :  { %v770_v0 = vmul.f32 %v769_v60, %v750_v26  ;;  %v1948_v1 = vadd.f32 %v586_v61, %v1913_v18  ;;  %v759_v11 = vmul.f32 %v758_v2, %v750_v26  ;;  %v795_v12 = vmul.f32 %v794_v3, %v1931_v42 }
  0xd0   :  { %v806_v4 = vmul.f32 %v805_v62, %v1931_v42  ;;  %v831_v5 = vmul.f32 2.1237322e-06, %v1945_v63  ;;  %v842_v7 = vmul.f32 3.8918573e-05, %v1945_v63 }
  0xd1   :  { %v771_v6 = vadd.f32 1.0, %v770_v0  ;;  %v1954_v8 = vmul.f32 0.70710677, %v1948_v1  ;;  %v760_v28 = vadd.f32 1.1283791, %v759_v11 }
  0xd2   :  { %v807_v9 = vadd.f32 0.112945676, %v806_v4  ;;  %v832_v10 = vadd.f32 0.00028619796, %v831_v5  ;;  %v843_v19 = vadd.f32 0.001143296, %v842_v7 }
  0xd3   :  { %1735 = vrcp.f32 %v771_v6  ;;  %v539_v15 = vpop.f32.mrf.mxu2  ;;  %v869_v20 = vmul.f32 %v1954_v8, %v1954_v8  ;;  %v796_v26 = vadd.f32 0.05243302, %v795_v12  ;;  %v781_v39 = vand.u32 2147483647, %v771_v6 }
  0xd4   :  { %v808_v13 = vmul.f32 %v807_v9, %v1931_v42  ;;  %v833_v14 = vmul.f32 %v832_v10, %v1945_v63  ;;  %v588_v17 = vpop.f32.mrf.mxu3  ;;  %v844_v25 = vmul.f32 %v843_v19, %v1945_v63  ;;  %v761_v21 = vmul.f32 %v760_v28, %v1919_v22 }
  0xd5   :  { %v1962_v27 = vmin.f32 %v869_v20, 16.0  ;;  %v589_v31 = vadd.f32 %v588_v17, %v539_v15  ;;  %v783_v50 = vand.u32 2147483648, %v771_v6  ;;  %v797_v51 = vmul.f32 %v796_v26, %v1931_v42 }
  0xd6   :  { %v809_v23 = vadd.f32 0.4994258, %v808_v13  ;;  %v834_v24 = vadd.f32 0.0036580483, %v833_v14  ;;  %v845_v34 = vadd.f32 0.014752088, %v844_v25  ;;  %vm777_vm1 = vweird.f32 %v771_v6 }
  0xd7   :  { %v871_v35 = vmul.f32 2.1237322e-06, %v1962_v27  ;;  %v882_v36 = vmul.f32 3.8918573e-05, %v1962_v27  ;;  %v1979_v49 = vadd.f32 %v589_v31, %v1913_v18  ;;  %vm1985_vm2 = vcmp.eq.f32.partialorder %v781_v39, 8.507059e+37  ;;  %v480_v31 = vpop.f32.mrf.mxu1 }
  0xd8   :  { %v810_v29 = vmul.f32 %v809_v23, %v1931_v42  ;;  %v835_v41 = vmul.f32 %v834_v24, %v1945_v63  ;;  %v846_v43 = vmul.f32 %v845_v34, %v1945_v63  ;;  %v784_v2 = vor.u32 1.1754944e-38, %v783_v50 }
  0xd9   :  { %v1736_v32 = vpop.eup %1735  ;;  %v872_v44 = vadd.f32 0.00028619796, %v871_v35  ;;  %v883_v46 = vadd.f32 0.001143296, %v882_v36  ;;  %v1991_v0 = vmul.f32 0.70710677, %v1979_v49 }
  0xda   :  { %v773_v38 = vmul.f32 %v1736_v32, %v771_v6  ;;  %v1970_v40 = vadd.f32 1.0, %v810_v29  ;;  %v847_v53 = vadd.f32 0.112945676, %v846_v43  ;;  %vm778_vm0 = vweird.f32 %v1736_v32  ;;  %v431_v29 = vpop.f32.mrf.mxu0 }
  0xdb   :  { %v873_v55 = vmul.f32 %v872_v44, %v1962_v27  ;;  %v884_v56 = vmul.f32 %v883_v46, %v1962_v27  ;;  %v541_v57 = vpop.f32.mrf.mxu2  ;;  %v836_v59 = vadd.f32 0.05243302, %v835_v41  ;;  %vm779_vm3 = vmor %vm777_vm1, %vm778_vm0  ;;  %v798_v3 = vadd.f32 0.18741608, %v797_v51 }
  0xdc   :  { %v774_v47 = vsub.f32 1.0, %v773_v38  ;;  %1737 = vrcp.f32 %v1970_v40  ;;  %v590_v30 = vpop.f32.mrf.mxu3  ;;  %v848_v22 = vmul.f32 %v847_v53, %v1945_v63  ;;  %v909_v11 = vmul.f32 %v1991_v0, %v1991_v0 }
  0xdd   :  { %v874_v61 = vadd.f32 0.0036580483, %v873_v55  ;;  %v885_v62 = vadd.f32 0.014752088, %v884_v56  ;;  %v591_v5 = vadd.f32 %v590_v30, %v541_v57  ;;  %v2004_v14 = vmul.f32 0.5, %v1934_v45 }
  0xde   :  { %v775_v54 = vmul.f32 %v1736_v32, %v774_v47  ;;  %v849_v4 = vadd.f32 0.4994258, %v848_v22  ;;  %v2007_v15 = vperm.slane %v1910_v16, 0  ;;  %v837_v19 = vmul.f32 %v836_v59, %v1945_v63 }
  0xdf   :  { %v875_v9 = vmul.f32 %v874_v61, %v1962_v27  ;;  %v886_v10 = vmul.f32 %v885_v62, %v1962_v27  ;;  %v799_v24 = vmul.f32 %v798_v3, %v1931_v42  ;;  %v2012_v26 = vmin.f32 %v909_v11, 16.0 }
  0xe0   :  { %v776_v60 = vadd.f32 %v1736_v32, %v775_v54  ;;  %v850_v20 = vmul.f32 %v849_v4, %v1945_v63  ;;  %v2018_v16 = vadd.f32 %v591_v5, %v1913_v18  ;;  %v481_v34 = vadd.f32 %v480_v31, %v431_v29 }
  0xe1   :  { %v887_v23 = vadd.f32 0.112945676, %v886_v10  ;;  %v876_v28 = vadd.f32 0.05243302, %v875_v9  ;;  %v823_v36 = vand.u32 2147483648, %v1970_v40  ;;  %vm817_vm5 = vweird.f32 %v1970_v40 }
  0xe2   :  { %v1993_v7 = vpop.eup %1737  ;;  %v780_v6 = vsel %vm779_vm3, %v1736_v32, %v776_v60  ;;  %v2014_v32 = vadd.f32 1.0, %v850_v20  ;;  %v911_v42 = vmul.f32 2.1237322e-06, %v2012_v26  ;;  %v922_v38 = vmul.f32 3.8918573e-05, %v2012_v26 }
  0xe3   :  { %v785_v12 = vsel %vm1985_vm2, %v784_v2, %v780_v6  ;;  %v813_v13 = vmul.f32 %v1993_v7, %v1970_v40  ;;  %v888_v45 = vmul.f32 %v887_v23, %v1962_v27  ;;  %vm818_vm4 = vweird.f32 %v1993_v7  ;;  %v544_v2 = vpop.f32.mrf.mxu2 }
  0xe4   :  { %v786_v17 = vmul.f32 %v785_v12, %v761_v21  ;;  %v838_v39 = vadd.f32 0.18741608, %v837_v19  ;;  %1739 = vrcp.f32 %v2014_v32  ;;  %v877_v44 = vmul.f32 %v876_v28, %v1962_v27  ;;  %vm2037_vm6 = vmor %vm817_vm5, %vm818_vm4  ;;  %v593_v3 = vpop.f32.mrf.mxu3 }
  0xe5   :  { %v814_v25 = vsub.f32 1.0, %v813_v13  ;;  %v889_v46 = vadd.f32 0.4994258, %v888_v45  ;;  %v912_v47 = vadd.f32 0.00028619796, %v911_v42  ;;  %v824_v54 = vor.u32 1.1754944e-38, %v823_v36 }
  0xe6   :  { %v1665_v41 = vclamps-f32 %v786_v17, 1.0  ;;  %v800_v21 = vadd.f32 1.1283791, %v799_v24  ;;  %v923_v50 = vadd.f32 0.001143296, %v922_v38  ;;  %v839_v30 = vmul.f32 %v838_v39, %v1945_v63 }
  0xe7   :  { %v815_v35 = vmul.f32 %v1993_v7, %v814_v25  ;;  %v2030_v51 = vmul.f32 0.70710677, %v2018_v16  ;;  %v821_v53 = vand.u32 2147483647, %v1970_v40  ;;  %v890_v55 = vmul.f32 %v889_v46, %v1962_v27 }
  0xe8   :  { %v913_v56 = vmul.f32 %v912_v47, %v2012_v26  ;;  %v924_v58 = vmul.f32 %v923_v50, %v2012_v26  ;;  %v1389_v22 = vadd.f32 1.0, %v1665_v41  ;;  %v878_v60 = vadd.f32 0.18741608, %v877_v44 }
  0xe9   :  { %v816_v43 = vadd.f32 %v1993_v7, %v815_v35  ;;  %v949_v59 = vmul.f32 %v2030_v51, %v2030_v51  ;;  %v2048_v61 = vadd.f32 1.0, %v890_v55  ;;  %v618_v62 = vadd.f32 %v481_v34, %v2007_v15 }
  0xea   :  { %v2051_v4 = vpop.eup %1739  ;;  %v914_v63 = vadd.f32 0.0036580483, %v913_v56  ;;  %v925_v5 = vadd.f32 0.014752088, %v924_v58  ;;  %v1405_v9 = vmul.f32 %v1389_v22, %v1968_v37  ;;  %vm822_vm7 = vcmp.eq.f32.partialorder %v821_v53, 8.507059e+37  ;;  %v433_v53 = vpop.f32.mrf.mxu0 }
  0xeb   :  { %v820_v40 = vsel %vm2037_vm6, %v1993_v7, %v816_v43  ;;  %v2053_v6 = vmin.f32 %v949_v59, 16.0  ;;  %v853_v10 = vmul.f32 %v2051_v4, %v2014_v32  ;;  %v2059_v7 = vmul.f32 0.5, %v1948_v1 }
  0xec   :  { %1741 = vrcp.f32 %v2048_v61  ;;  %v801_v11 = vmul.f32 %v800_v21, %v1927_v33  ;;  %v825_v12 = vsel %vm822_vm7, %v824_v54, %v820_v40  ;;  %v2064_v13 = vmul.f32 0.5, %v1979_v49  ;;  %v482_v54 = vpop.f32.mrf.mxu1 }
  0xed   :  { %v594_v17 = vadd.f32 %v593_v3, %v544_v2  ;;  %v854_v19 = vsub.f32 1.0, %v853_v10  ;;  %v926_v20 = vmul.f32 %v925_v5, %v2012_v26  ;;  %v951_v37 = vmul.f32 2.1237322e-06, %v2053_v6  ;;  %v546_v2 = vpop.f32.mrf.mxu2  ;;  %v595_v3 = vpop.f32.mrf.mxu3 }
  0xee   :  { %v962_v23 = vmul.f32 3.8918573e-05, %v2053_v6  ;;  %v840_v24 = vadd.f32 1.1283791, %v839_v30  ;;  %v879_v1 = vmul.f32 %v878_v60, %v1962_v27  ;;  %v915_v25 = vmul.f32 %v914_v63, %v2012_v26 }
  0xef   :  { %v1421_v28 = vmul.f32 %v1405_v9, %v618_v62  ;;  %v855_v33 = vmul.f32 %v2051_v4, %v854_v19  ;;  %v927_v29 = vadd.f32 0.112945676, %v926_v20  ;;  %v952_v31 = vadd.f32 0.00028619796, %v951_v37 }
  0xf0   :  { %v963_v49 = vadd.f32 0.001143296, %v962_v23  ;;  %v826_v45 = vmul.f32 %v825_v12, %v801_v11  ;;  %vm858_vm8 = vweird.f32 %v2051_v4  ;;  %v861_v34 = vand.u32 2147483647, %v2014_v32 }
  0xf1   :  { %1437 = vst [vmem:[#allocation9] sm:$0xff] %v1421_v28  ;;  %v2075_v35 = vadd.f32 %v594_v17, %v1913_v18  ;;  %v856_v27 = vadd.f32 %v2051_v4, %v855_v33  ;;  %v928_v42 = vmul.f32 %v927_v29, %v2012_v26  ;;  %v953_v38 = vmul.f32 %v952_v31, %v2053_v6 }
  0xf2   :  { %v2077_v36 = vpop.eup %1741  ;;  %v964_v39 = vmul.f32 %v963_v49, %v2053_v6  ;;  %v863_v41 = vand.u32 2147483648, %v2014_v32  ;;  %v880_v43 = vadd.f32 1.1283791, %v879_v1  ;;  %v916_v46 = vadd.f32 0.05243302, %v915_v25 }
  0xf3   :  { %v893_v44 = vmul.f32 %v2077_v36, %v2048_v61  ;;  %vm857_vm9 = vweird.f32 %v2014_v32  ;;  %v929_v47 = vadd.f32 0.4994258, %v928_v42  ;;  %v954_v21 = vadd.f32 0.0036580483, %v953_v38  ;;  %v436_v38 = vpop.f32.mrf.mxu0 }
  0xf4   :  { %v965_v50 = vadd.f32 0.014752088, %v964_v39  ;;  %v841_v55 = vmul.f32 %v840_v24, %v1939_v52  ;;  %vm2090_vm10 = vmor %vm857_vm9, %vm858_vm8  ;;  %v2095_v57 = vmul.f32 0.5, %v2018_v16  ;;  %v2098_v30 = vmul.f32 0.70710677, %v2075_v35  ;;  %v485_v39 = vpop.f32.mrf.mxu1 }
  0xf5   :  { %v1666_v32 = vclamps-f32 %v826_v45, 1.0  ;;  %v860_v58 = vsel %vm2090_vm10, %v2051_v4, %v856_v27  ;;  %v930_v59 = vmul.f32 %v929_v47, %v2012_v26  ;;  %v955_v52 = vmul.f32 %v954_v21, %v2053_v6 }
  0xf6   :  { %v966_v22 = vmul.f32 %v965_v50, %v2053_v6  ;;  %v864_v40 = vor.u32 1.1754944e-38, %v863_v41  ;;  %v894_v60 = vsub.f32 1.0, %v893_v44  ;;  %v917_v62 = vmul.f32 %v916_v46, %v2012_v26 }
  0xf7   :  { %v989_v16 = vmul.f32 %v2098_v30, %v2098_v30  ;;  %vm862_vm11 = vcmp.eq.f32.partialorder %v861_v34, 8.507059e+37  ;;  %v2110_v63 = vmul.f32 %v880_v43, %v1954_v8  ;;  %v2112_v4 = vadd.f32 1.0, %v930_v59 }
  0xf8   :  { %v967_v5 = vadd.f32 0.112945676, %v966_v22  ;;  %v865_v9 = vsel %vm862_vm11, %v864_v40, %v860_v58  ;;  %v901_v10 = vand.u32 2147483647, %v2048_v61  ;;  %v483_v12 = vadd.f32 %v482_v54, %v433_v53  ;;  %v549_v40 = vpop.f32.mrf.mxu2 }
  0xf9   :  { %v2115_v11 = vmin.f32 %v989_v16, 16.0  ;;  %1743 = vrcp.f32 %v2112_v4  ;;  %v956_v17 = vadd.f32 0.05243302, %v955_v52  ;;  %v1390_v19 = vadd.f32 1.0, %v1666_v32 }
  0xfa   :  { %v596_v20 = vadd.f32 %v595_v3, %v546_v2  ;;  %v895_v37 = vmul.f32 %v2077_v36, %v894_v60  ;;  %v918_v23 = vadd.f32 0.18741608, %v917_v62  ;;  %v968_v8 = vmul.f32 %v967_v5, %v2053_v6  ;;  %v598_v60 = vpop.f32.mrf.mxu3 }
  0xfb   :  { %v991_v24 = vmul.f32 2.1237322e-06, %v2115_v11  ;;  %vm897_vm12 = vweird.f32 %v2048_v61  ;;  %vm898_vm13 = vweird.f32 %v2077_v36  ;;  %v903_v1 = vand.u32 2147483648, %v2048_v61 }
  0xfc   :  { %v1002_v25 = vmul.f32 3.8918573e-05, %v2115_v11  ;;  %v866_v28 = vmul.f32 %v865_v9, %v841_v55  ;;  %vm2125_vm14 = vcmp.eq.f32.partialorder %v901_v10, 8.507059e+37  ;;  %v969_v29 = vadd.f32 0.4994258, %v968_v8  ;;  %vm2153_vm15 = vmor %vm897_vm12, %vm898_vm13 }
  0xfd   :  { %v992_v31 = vadd.f32 0.00028619796, %v991_v24  ;;  %v620_v49 = vadd.f32 %v483_v12, %v2007_v15  ;;  %v957_v45 = vmul.f32 %v956_v17, %v2053_v6  ;;  %v1406_v27 = vmul.f32 %v1390_v19, %v1975_v48 }
  0xfe   :  { %v1003_v34 = vadd.f32 0.001143296, %v1002_v25  ;;  %v2133_v42 = vadd.f32 %v596_v20, %v1913_v18  ;;  %v896_v41 = vadd.f32 %v2077_v36, %v895_v37  ;;  %v919_v43 = vmul.f32 %v918_v23, %v2012_v26 }
  0xff   :  { %v970_v44 = vmul.f32 %v969_v29, %v2053_v6  ;;  %v486_v46 = vadd.f32 %v485_v39, %v436_v38  ;;  %v2138_v47 = vpop.eup %1743  ;;  %v993_v21 = vmul.f32 %v992_v31, %v2115_v11  ;;  %v1422_v53 = vmul.f32 %v1406_v27, %v620_v49 }
 0x100   :  { %v1004_v50 = vmul.f32 %v1003_v34, %v2115_v11  ;;  %v2143_v48 = vmul.f32 0.70710677, %v2133_v42  ;;  %v904_v54 = vor.u32 1.1754944e-38, %v903_v1  ;;  %v933_v55 = vmul.f32 %v2138_v47, %v2112_v4 }
 0x101   :  { %v2147_v56 = vadd.f32 1.0, %v970_v44  ;;  %v1667_v26 = vclamps-f32 %v866_v28, 1.0  ;;  %v958_v58 = vadd.f32 0.18741608, %v957_v45  ;;  %v2158_v59 = vmul.f32 0.5, %v2075_v35  ;;  %1438 = vst [vmem:[#allocation9 + $0x8] sm:$0xff] %v1422_v53 }
 0x102   :  { %v1005_v52 = vadd.f32 0.014752088, %v1004_v50  ;;  %v1029_v22 = vmul.f32 %v2143_v48, %v2143_v48  ;;  %v900_v62 = vsel %vm2153_vm15, %v2077_v36, %v896_v41  ;;  %v920_v61 = vadd.f32 1.1283791, %v919_v43  ;;  %v487_v50 = vpop.f32.mrf.mxu1 }
 0x103   :  { %v934_v16 = vsub.f32 1.0, %v933_v55  ;;  %1745 = vrcp.f32 %v2147_v56  ;;  %v941_v2 = vand.u32 2147483647, %v2112_v4  ;;  %v994_v3 = vadd.f32 0.0036580483, %v993_v21  ;;  %v438_v21 = vpop.f32.mrf.mxu0 }
 0x104   :  { %v1006_v35 = vmul.f32 %v1005_v52, %v2115_v11  ;;  %v622_v5 = vadd.f32 %v486_v46, %v2007_v15  ;;  %v2170_v10 = vmin.f32 %v1029_v22, 16.0  ;;  %v1391_v12 = vadd.f32 1.0, %v1667_v26  ;;  %v551_v22 = vpop.f32.mrf.mxu2 }
 0x105   :  { %v935_v9 = vmul.f32 %v2138_v47, %v934_v16  ;;  %v599_v17 = vadd.f32 %v598_v60, %v549_v40  ;;  %v905_v36 = vsel %vm2125_vm14, %v904_v54, %v900_v62  ;;  %v943_v19 = vand.u32 2147483648, %v2112_v4  ;;  %v600_v40 = vpop.f32.mrf.mxu3 }
 0x106   :  { %v959_v20 = vmul.f32 %v958_v58, %v2053_v6  ;;  %v1007_v37 = vadd.f32 0.112945676, %v1006_v35  ;;  %vm938_vm0 = vweird.f32 %v2138_v47  ;;  %v1031_v23 = vmul.f32 2.1237322e-06, %v2170_v10 }
 0x107   :  { %v1042_v8 = vmul.f32 3.8918573e-05, %v2170_v10  ;;  %v1407_v24 = vmul.f32 %v1391_v12, %v2004_v14  ;;  %v936_v1 = vadd.f32 %v2138_v47, %v935_v9  ;;  %v995_v25 = vmul.f32 %v994_v3, %v2115_v11 }
 0x108   :  { %v1008_v28 = vmul.f32 %v1007_v37, %v2115_v11  ;;  %v2184_v33 = vadd.f32 %v599_v17, %v1913_v18  ;;  %v921_v6 = vmul.f32 %v920_v61, %v1991_v0  ;;  %v1032_v31 = vadd.f32 0.00028619796, %v1031_v23 }
 0x109   :  { %v2186_v29 = vpop.eup %1745  ;;  %v1043_v49 = vadd.f32 0.001143296, %v1042_v8  ;;  %v1423_v45 = vmul.f32 %v1407_v24, %v622_v5  ;;  %v906_v34 = vmul.f32 %v905_v36, %v2110_v63  ;;  %vm937_vm1 = vweird.f32 %v2112_v4 }
 0x10a   :  { %v960_v14 = vadd.f32 1.1283791, %v959_v20  ;;  %v973_v27 = vmul.f32 %v2186_v29, %v2147_v56  ;;  %vm2195_vm2 = vmor %vm937_vm1, %vm938_vm0  ;;  %vm2199_vm3 = vcmp.eq.f32.partialorder %v941_v2, 8.507059e+37  ;;  %v1009_v0 = vadd.f32 0.4994258, %v1008_v28  ;;  %v490_v38 = vpop.f32.mrf.mxu1 }
 0x10b   :  { %v1033_v41 = vmul.f32 %v1032_v31, %v2170_v10  ;;  %v1044_v63 = vmul.f32 %v1043_v49, %v2170_v10  ;;  %1439 = vst [vmem:[#allocation9 + $0x10] sm:$0xff] %v1423_v45  ;;  %v940_v4 = vsel %vm2195_vm2, %v2138_v47, %v936_v1  ;;  %v944_v43 = vor.u32 1.1754944e-38, %v943_v19 }
 0x10c   :  { %v996_v44 = vadd.f32 0.05243302, %v995_v25  ;;  %v2209_v46 = vmul.f32 0.70710677, %v2184_v33  ;;  %v974_v53 = vsub.f32 1.0, %v973_v27  ;;  %v1010_v54 = vmul.f32 %v1009_v0, %v2115_v11  ;;  %v441_v27 = vpop.f32.mrf.mxu0 }
 0x10d   :  { %v2213_v55 = vmul.f32 0.5, %v2133_v42  ;;  %v1045_v26 = vadd.f32 0.014752088, %v1044_v63  ;;  %v2216_v32 = vmul.f32 %v960_v14, %v2030_v51  ;;  %v1034_v58 = vadd.f32 0.0036580483, %v1033_v41 }
 0x10e   :  { %v1069_v47 = vmul.f32 %v2209_v46, %v2209_v46  ;;  %v1668_v52 = vclamps-f32 %v906_v34, 1.0  ;;  %v945_v60 = vsel %vm2199_vm3, %v944_v43, %v940_v4  ;;  %v983_v62 = vand.u32 2147483648, %v2147_v56 }
 0x10f   :  { %v2223_v61 = vadd.f32 1.0, %v1010_v54  ;;  %v1046_v42 = vmul.f32 %v1045_v26, %v2170_v10  ;;  %v981_v16 = vand.u32 2147483647, %v2147_v56  ;;  %v997_v51 = vmul.f32 %v996_v44, %v2115_v11 }
 0x110   :  { %v2228_v2 = vmin.f32 %v1069_v47, 16.0  ;;  %v488_v3 = vadd.f32 %v487_v50, %v438_v21  ;;  %v975_v35 = vmul.f32 %v2186_v29, %v974_v53  ;;  %v1392_v5 = vadd.f32 1.0, %v1668_v52 }
 0x111   :  { %1747 = vrcp.f32 %v2223_v61  ;;  %v601_v9 = vadd.f32 %v600_v40, %v551_v22  ;;  %v946_v12 = vmul.f32 %v945_v60, %v921_v6  ;;  %v1035_v17 = vmul.f32 %v1034_v58, %v2170_v10  ;;  %v554_v40 = vpop.f32.mrf.mxu2  ;;  %v603_v60 = vpop.f32.mrf.mxu3 }
 0x112   :  { %v1047_v36 = vadd.f32 0.112945676, %v1046_v42  ;;  %v1071_v19 = vmul.f32 2.1237322e-06, %v2228_v2  ;;  %vm977_vm4 = vweird.f32 %v2147_v56  ;;  %vm978_vm5 = vweird.f32 %v2186_v29 }
 0x113   :  { %v984_v20 = vor.u32 1.1754944e-38, %v983_v62  ;;  %v1082_v37 = vmul.f32 3.8918573e-05, %v2228_v2  ;;  %vm2237_vm6 = vcmp.eq.f32.partialorder %v981_v16, 8.507059e+37  ;;  %v998_v8 = vadd.f32 0.18741608, %v997_v51  ;;  %vm2259_vm7 = vmor %vm977_vm4, %vm978_vm5 }
 0x114   :  { %v1048_v24 = vmul.f32 %v1047_v36, %v2170_v10  ;;  %v1072_v1 = vadd.f32 0.00028619796, %v1071_v19  ;;  %v624_v25 = vadd.f32 %v488_v3, %v2007_v15  ;;  %v976_v28 = vadd.f32 %v2186_v29, %v975_v35 }
 0x115   :  { %v1083_v6 = vadd.f32 0.001143296, %v1082_v37  ;;  %v1408_v31 = vmul.f32 %v1392_v5, %v2059_v7  ;;  %v2246_v49 = vadd.f32 %v601_v9, %v1913_v18  ;;  %v1036_v45 = vadd.f32 0.05243302, %v1035_v17 }
 0x116   :  { %v1049_v34 = vadd.f32 0.4994258, %v1048_v24  ;;  %v1073_v14 = vmul.f32 %v1072_v1, %v2228_v2  ;;  %v1669_v39 = vclamps-f32 %v946_v12, 1.0  ;;  %v491_v43 = vadd.f32 %v490_v38, %v441_v27  ;;  %v443_v27 = vpop.f32.mrf.mxu0  ;;  %v492_v38 = vpop.f32.mrf.mxu1 }
 0x117   :  { %v2249_v0 = vpop.eup %1747  ;;  %v1084_v41 = vmul.f32 %v1083_v6, %v2228_v2  ;;  %v1424_v63 = vmul.f32 %v1408_v31, %v624_v25  ;;  %v2253_v4 = vmul.f32 0.70710677, %v2246_v49  ;;  %v999_v44 = vmul.f32 %v998_v8, %v2115_v11 }
 0x118   :  { %v1013_v21 = vmul.f32 %v2249_v0, %v2223_v61  ;;  %v1050_v50 = vmul.f32 %v1049_v34, %v2170_v10  ;;  %v2268_v53 = vmul.f32 0.5, %v2184_v33  ;;  %v980_v54 = vsel %vm2259_vm7, %v2186_v29, %v976_v28 }
 0x119   :  { %v1074_v26 = vadd.f32 0.0036580483, %v1073_v14  ;;  %v1085_v56 = vadd.f32 0.014752088, %v1084_v41  ;;  %1440 = vst [vmem:[#allocation9 + $0x18] sm:$0xff] %v1424_v63  ;;  %v1109_v58 = vmul.f32 %v2253_v4, %v2253_v4  ;;  %v1037_v11 = vmul.f32 %v1036_v45, %v2170_v10 }
 0x11a   :  { %v1014_v47 = vsub.f32 1.0, %v1013_v21  ;;  %v2276_v52 = vadd.f32 1.0, %v1050_v50  ;;  %v1393_v22 = vadd.f32 1.0, %v1669_v39  ;;  %v626_v29 = vadd.f32 %v491_v43, %v2007_v15  ;;  %v556_v50 = vpop.f32.mrf.mxu2 }
 0x11b   :  { %v1075_v33 = vmul.f32 %v1074_v26, %v2228_v2  ;;  %v1086_v62 = vmul.f32 %v1085_v56, %v2228_v2  ;;  %v2280_v42 = vmin.f32 %v1109_v58, 16.0  ;;  %v1000_v16 = vadd.f32 1.1283791, %v999_v44 }
 0x11c   :  { %v1015_v51 = vmul.f32 %v2249_v0, %v1014_v47  ;;  %v1021_v3 = vand.u32 2147483647, %v2223_v61  ;;  %1749 = vrcp.f32 %v2276_v52  ;;  %v985_v35 = vsel %vm2237_vm6, %v984_v20, %v980_v54  ;;  %v605_v54 = vpop.f32.mrf.mxu3 }
 0x11d   :  { %vm1018_vm8 = vweird.f32 %v2249_v0  ;;  %v1409_v5 = vmul.f32 %v1393_v22, %v2064_v13  ;;  %v604_v9 = vadd.f32 %v603_v60, %v554_v40  ;;  %v1087_v17 = vadd.f32 0.112945676, %v1086_v62 }
 0x11e   :  { %v1016_v12 = vadd.f32 %v2249_v0, %v1015_v51  ;;  %v1111_v36 = vmul.f32 2.1237322e-06, %v2280_v42  ;;  %v1122_v19 = vmul.f32 3.8918573e-05, %v2280_v42  ;;  %v1023_v37 = vand.u32 2147483648, %v2223_v61 }
 0x11f   :  { %v1038_v8 = vadd.f32 0.18741608, %v1037_v11  ;;  %v1076_v24 = vadd.f32 0.05243302, %v1075_v33  ;;  %v1425_v1 = vmul.f32 %v1409_v5, %v626_v29  ;;  %vm1017_vm9 = vweird.f32 %v2223_v61 }
 0x120   :  { %v1088_v20 = vmul.f32 %v1087_v17, %v2228_v2  ;;  %v1112_v23 = vadd.f32 0.00028619796, %v1111_v36  ;;  %v1123_v25 = vadd.f32 0.001143296, %v1122_v19  ;;  %v986_v13 = vmul.f32 %v985_v35, %v2216_v32  ;;  %vm2300_vm10 = vmor %vm1017_vm9, %vm1018_vm8 }
 0x121   :  { %v1001_v28 = vmul.f32 %v1000_v16, %v2098_v30  ;;  %vm2304_vm11 = vcmp.eq.f32.partialorder %v1021_v3, 8.507059e+37  ;;  %1441 = vst [vmem:[#allocation9 + $0x20] sm:$0xff] %v1425_v1  ;;  %v2309_v61 = vadd.f32 %v604_v9, %v1913_v18  ;;  %v1020_v30 = vsel %vm2300_vm10, %v2249_v0, %v1016_v12 }
 0x122   :  { %v2311_v45 = vpop.eup %1749  ;;  %v1089_v32 = vadd.f32 0.4994258, %v1088_v20  ;;  %v1113_v34 = vmul.f32 %v1112_v23, %v2280_v42  ;;  %v1124_v14 = vmul.f32 %v1123_v25, %v2280_v42  ;;  %v1024_v39 = vor.u32 1.1754944e-38, %v1023_v37 }
 0x123   :  { %v1039_v41 = vmul.f32 %v1038_v8, %v2170_v10  ;;  %v1053_v63 = vmul.f32 %v2311_v45, %v2276_v52  ;;  %v1077_v43 = vmul.f32 %v1076_v24, %v2228_v2  ;;  %v2324_v0 = vmul.f32 0.70710677, %v2309_v61 }
 0x124   :  { %v1090_v7 = vmul.f32 %v1089_v32, %v2228_v2  ;;  %v1114_v44 = vadd.f32 0.0036580483, %v1113_v34  ;;  %v1125_v21 = vadd.f32 0.014752088, %v1124_v14  ;;  %v1025_v26 = vsel %vm2304_vm11, %v1024_v39, %v1020_v30 }
 0x125   :  { %v1054_v56 = vsub.f32 1.0, %v1053_v63  ;;  %v493_v58 = vadd.f32 %v492_v38, %v443_v27  ;;  %v1670_v10 = vclamps-f32 %v986_v13, 1.0  ;;  %v1149_v40 = vmul.f32 %v2324_v0, %v2324_v0  ;;  %v446_v13 = vpop.f32.mrf.mxu0 }
 0x126   :  { %v2328_v47 = vadd.f32 1.0, %v1090_v7  ;;  %v1115_v11 = vmul.f32 %v1114_v44, %v2280_v42  ;;  %v1126_v22 = vmul.f32 %v1125_v21, %v2280_v42  ;;  %v1040_v60 = vadd.f32 1.1283791, %v1039_v41  ;;  %v559_v21 = vpop.f32.mrf.mxu2 }
 0x127   :  { %v2335_v33 = vmul.f32 0.5, %v2246_v49  ;;  %v1394_v62 = vadd.f32 1.0, %v1670_v10  ;;  %v606_v29 = vadd.f32 %v605_v54, %v556_v50  ;;  %v1061_v16 = vand.u32 2147483647, %v2276_v52  ;;  %v608_v50 = vpop.f32.mrf.mxu3 }
 0x128   :  { %v1063_v51 = vand.u32 2147483648, %v2276_v52  ;;  %v1078_v3 = vadd.f32 0.18741608, %v1077_v43  ;;  %1751 = vrcp.f32 %v2328_v47  ;;  %v1026_v35 = vmul.f32 %v1025_v26, %v1001_v28  ;;  %v495_v28 = vpop.f32.mrf.mxu1 }
 0x129   :  { %v1116_v5 = vadd.f32 0.05243302, %v1115_v11  ;;  %v1127_v9 = vadd.f32 0.112945676, %v1126_v22  ;;  %v2340_v12 = vmin.f32 %v1149_v40, 16.0  ;;  %v1055_v17 = vmul.f32 %v2311_v45, %v1054_v56 }
 0x12a   :  { %v628_v36 = vadd.f32 %v493_v58, %v2007_v15  ;;  %v1410_v49 = vmul.f32 %v1394_v62, %v2095_v57  ;;  %v2346_v19 = vadd.f32 %v606_v29, %v1913_v18  ;;  %v2349_v37 = vmul.f32 %v1040_v60, %v2143_v48 }
 0x12b   :  { %vm1057_vm12 = vweird.f32 %v2276_v52  ;;  %v1128_v8 = vmul.f32 %v1127_v9, %v2280_v42  ;;  %v1151_v24 = vmul.f32 2.1237322e-06, %v2340_v12  ;;  %vm2354_vm13 = vcmp.eq.f32.partialorder %v1061_v16, 8.507059e+37 }
 0x12c   :  { %v1064_v20 = vor.u32 1.1754944e-38, %v1063_v51  ;;  %v1079_v23 = vmul.f32 %v1078_v3, %v2228_v2  ;;  %v1162_v57 = vmul.f32 3.8918573e-05, %v2340_v12  ;;  %v1426_v25 = vmul.f32 %v1410_v49, %v628_v36 }
 0x12d   :  { %vm1058_vm14 = vweird.f32 %v2311_v45  ;;  %v1117_v48 = vmul.f32 %v1116_v5, %v2280_v42  ;;  %v1129_v6 = vadd.f32 0.4994258, %v1128_v8  ;;  %v1152_v31 = vadd.f32 0.00028619796, %v1151_v24  ;;  %v448_v8 = vpop.f32.mrf.mxu0 }
 0x12e   :  { %v2362_v30 = vpop.eup %1751  ;;  %v1056_v32 = vadd.f32 %v2311_v45, %v1055_v17  ;;  %v1163_v34 = vadd.f32 0.001143296, %v1162_v57  ;;  %1442 = vst [vmem:[#allocation9 + $0x28] sm:$0xff] %v1426_v25  ;;  %v2366_v14 = vmul.f32 0.70710677, %v2346_v19  ;;  %v1671_v2 = vclamps-f32 %v1026_v35, 1.0  ;;  %vm2384_vm15 = vmor %vm1057_vm12, %vm1058_vm14 }
 0x12f   :  { %v1093_v27 = vmul.f32 %v2362_v30, %v2328_v47  ;;  %v1130_v38 = vmul.f32 %v1129_v6, %v2280_v42  ;;  %v2372_v39 = vmul.f32 0.5, %v2309_v61  ;;  %v496_v41 = vadd.f32 %v495_v28, %v446_v13 }
 0x130   :  { %v2374_v63 = vadd.f32 1.1283791, %v1079_v23  ;;  %v1153_v43 = vmul.f32 %v1152_v31, %v2340_v12  ;;  %v1164_v7 = vmul.f32 %v1163_v34, %v2340_v12  ;;  %v1189_v44 = vmul.f32 %v2366_v14, %v2366_v14  ;;  %v497_v24 = vpop.f32.mrf.mxu1 }
 0x131   :  { %v1094_v61 = vsub.f32 1.0, %v1093_v27  ;;  %v1118_v26 = vadd.f32 0.18741608, %v1117_v48  ;;  %v2388_v56 = vadd.f32 1.0, %v1130_v38  ;;  %v1395_v58 = vadd.f32 1.0, %v1671_v2  ;;  %v561_v27 = vpop.f32.mrf.mxu2  ;;  %v610_v38 = vpop.f32.mrf.mxu3 }
 0x132   :  { %v1060_v10 = vsel %vm2384_vm15, %v2311_v45, %v1056_v32  ;;  %v1154_v11 = vadd.f32 0.0036580483, %v1153_v43  ;;  %v1165_v22 = vadd.f32 0.014752088, %v1164_v7  ;;  %v2393_v40 = vmin.f32 %v1189_v44, 16.0 }
 0x133   :  { %v1095_v60 = vmul.f32 %v2362_v30, %v1094_v61  ;;  %v1101_v52 = vand.u32 2147483647, %v2328_v47  ;;  %1753 = vrcp.f32 %v2388_v56  ;;  %v630_v62 = vadd.f32 %v496_v41, %v2007_v15 }
 0x134   :  { %v1103_v29 = vand.u32 2147483648, %v2328_v47  ;;  %v1155_v16 = vmul.f32 %v1154_v11, %v2340_v12  ;;  %v1166_v51 = vmul.f32 %v1165_v22, %v2340_v12  ;;  %v609_v3 = vadd.f32 %v608_v50, %v559_v21 }
 0x135   :  { %v1065_v45 = vsel %vm2354_vm13, %v1064_v20, %v1060_v10  ;;  %v1191_v35 = vmul.f32 2.1237322e-06, %v2393_v40  ;;  %v1202_v5 = vmul.f32 3.8918573e-05, %v2393_v40  ;;  %v1411_v9 = vmul.f32 %v1395_v58, %v2158_v59 }
 0x136   :  { %vm1098_vm0 = vweird.f32 %v2362_v30  ;;  %v1119_v17 = vmul.f32 %v1118_v26, %v2280_v42  ;;  %v1156_v36 = vadd.f32 0.05243302, %v1155_v16  ;;  %v1167_v49 = vadd.f32 0.112945676, %v1166_v51 }
 0x137   :  { %v1096_v23 = vadd.f32 %v2362_v30, %v1095_v60  ;;  %v1192_v57 = vadd.f32 0.00028619796, %v1191_v35  ;;  %v1203_v25 = vadd.f32 0.001143296, %v1202_v5  ;;  %v1427_v1 = vmul.f32 %v1411_v9, %v630_v62  ;;  %v451_v5 = vpop.f32.mrf.mxu0 }
 0x138   :  { %vm1097_vm1 = vweird.f32 %v2328_v47  ;;  %v1157_v20 = vmul.f32 %v1156_v36, %v2340_v12  ;;  %v1168_v13 = vmul.f32 %v1167_v49, %v2340_v12  ;;  %v2414_v59 = vadd.f32 %v609_v3, %v1913_v18  ;;  %v500_v9 = vpop.f32.mrf.mxu1 }
 0x139   :  { %v2416_v28 = vpop.eup %1753  ;;  %v1066_v42 = vmul.f32 %v1065_v45, %v2349_v37  ;;  %vm2419_vm2 = vcmp.eq.f32.partialorder %v1101_v52, 8.507059e+37  ;;  %v1193_v6 = vmul.f32 %v1192_v57, %v2393_v40  ;;  %v1204_v31 = vmul.f32 %v1203_v25, %v2393_v40  ;;  %1443 = vst [vmem:[#allocation9 + $0x30] sm:$0xff] %v1427_v1  ;;  %vm2427_vm3 = vmor %vm1097_vm1, %vm1098_vm0 }
 0x13a   :  { %v1104_v32 = vor.u32 1.1754944e-38, %v1103_v29  ;;  %v1120_v34 = vadd.f32 1.1283791, %v1119_v17  ;;  %v1133_v37 = vmul.f32 %v2416_v28, %v2388_v56  ;;  %v1169_v2 = vadd.f32 0.4994258, %v1168_v13 }
 0x13b   :  { %v1100_v41 = vsel %vm2427_vm3, %v2362_v30, %v1096_v23  ;;  %v1158_v43 = vadd.f32 0.18741608, %v1157_v20  ;;  %v1194_v7 = vadd.f32 0.0036580483, %v1193_v6  ;;  %v1205_v44 = vadd.f32 0.014752088, %v1204_v31 }
 0x13c   :  { %v1134_v21 = vsub.f32 1.0, %v1133_v37  ;;  %v1141_v50 = vand.u32 2147483647, %v2388_v56  ;;  %v1170_v54 = vmul.f32 %v1169_v2, %v2340_v12  ;;  %v2439_v61 = vmul.f32 0.70710677, %v2414_v59 }
 0x13d   :  { %v1195_v26 = vmul.f32 %v1194_v7, %v2393_v40  ;;  %v1206_v58 = vmul.f32 %v1205_v44, %v2393_v40  ;;  %v1672_v10 = vclamps-f32 %v1066_v42, 1.0  ;;  %v611_v11 = vadd.f32 %v610_v38, %v561_v27 }
 0x13e   :  { %v1105_v30 = vsel %vm2419_vm2, %v1104_v32, %v1100_v41  ;;  %v2445_v22 = vadd.f32 1.0, %v1170_v54  ;;  %v1229_v60 = vmul.f32 %v2439_v61, %v2439_v61  ;;  %v498_v52 = vadd.f32 %v497_v24, %v448_v8 }
 0x13f   :  { %v1135_v62 = vmul.f32 %v2416_v28, %v1134_v21  ;;  %v1159_v29 = vmul.f32 %v1158_v43, %v2340_v12  ;;  %v1207_v16 = vadd.f32 0.112945676, %v1206_v58  ;;  %v1396_v51 = vadd.f32 1.0, %v1672_v10  ;;  %v564_v21 = vpop.f32.mrf.mxu2 }
 0x140   :  { %v1081_v3 = vmul.f32 %v2374_v63, %v2209_v46  ;;  %v1121_v45 = vmul.f32 %v1120_v34, %v2253_v4  ;;  %1755 = vrcp.f32 %v2445_v22  ;;  %v1196_v35 = vadd.f32 0.05243302, %v1195_v26 }
 0x141   :  { %vm1137_vm4 = vweird.f32 %v2388_v56  ;;  %v1143_v17 = vand.u32 2147483648, %v2388_v56  ;;  %v1208_v36 = vmul.f32 %v1207_v16, %v2393_v40  ;;  %v2459_v12 = vadd.f32 %v611_v11, %v1913_v18  ;;  %v453_v11 = vpop.f32.mrf.mxu0 }
 0x142   :  { %v1106_v49 = vmul.f32 %v1105_v30, %v1081_v3  ;;  %vm2461_vm5 = vcmp.eq.f32.partialorder %v1141_v50, 8.507059e+37  ;;  %v2465_v46 = vmin.f32 %v1229_v60, 16.0  ;;  %v1412_v4 = vmul.f32 %v1396_v51, %v2213_v55  ;;  %v613_v50 = vpop.f32.mrf.mxu3  ;;  %v502_v30 = vpop.f32.mrf.mxu1 }
 0x143   :  { %v1136_v63 = vadd.f32 %v2416_v28, %v1135_v62  ;;  %vm1138_vm6 = vweird.f32 %v2416_v28  ;;  %v1160_v24 = vadd.f32 1.1283791, %v1159_v29  ;;  %v632_v23 = vadd.f32 %v498_v52, %v2007_v15 }
 0x144   :  { %v1197_v57 = vmul.f32 %v1196_v35, %v2393_v40  ;;  %v1209_v25 = vadd.f32 0.4994258, %v1208_v36  ;;  %v1231_v1 = vmul.f32 2.1237322e-06, %v2465_v46  ;;  %v1242_v20 = vmul.f32 3.8918573e-05, %v2465_v46  ;;  %vm2481_vm7 = vmor %vm1137_vm4, %vm1138_vm6 }
 0x145   :  { %v1144_v13 = vor.u32 1.1754944e-38, %v1143_v17  ;;  %v1428_v42 = vmul.f32 %v1412_v4, %v632_v23  ;;  %v2475_v48 = vmul.f32 0.70710677, %v2459_v12  ;;  %v501_v55 = vadd.f32 %v500_v9, %v451_v5 }
 0x146   :  { %v2477_v6 = vpop.eup %1755  ;;  %v1210_v47 = vmul.f32 %v1209_v25, %v2393_v40  ;;  %v1232_v32 = vadd.f32 0.00028619796, %v1231_v1  ;;  %v1243_v34 = vadd.f32 0.001143296, %v1242_v20  ;;  %v1673_v37 = vclamps-f32 %v1106_v49, 1.0 }
 0x147   :  { %v1140_v2 = vsel %vm2481_vm7, %v2416_v28, %v1136_v63  ;;  %v2490_v27 = vmul.f32 %v1160_v24, %v2324_v0  ;;  %v1173_v38 = vmul.f32 %v2477_v6, %v2445_v22  ;;  %1444 = vst [vmem:[#allocation9 + $0x38] sm:$0xff] %v1428_v42  ;;  %v1269_v56 = vmul.f32 %v2475_v48, %v2475_v48 }
 0x148   :  { %v1198_v41 = vadd.f32 0.18741608, %v1197_v57  ;;  %v2496_v43 = vadd.f32 1.0, %v1210_v47  ;;  %v1233_v7 = vmul.f32 %v1232_v32, %v2465_v46  ;;  %v1244_v44 = vmul.f32 %v1243_v34, %v2465_v46 }
 0x149   :  { %v1174_v28 = vsub.f32 1.0, %v1173_v38  ;;  %vm1177_vm8 = vweird.f32 %v2445_v22  ;;  %v2501_v0 = vmin.f32 %v1269_v56, 16.0  ;;  %v1397_v54 = vadd.f32 1.0, %v1673_v37 }
 0x14a   :  { %v1145_v26 = vsel %vm2461_vm5, %v1144_v13, %v1140_v2  ;;  %v1181_v58 = vand.u32 2147483647, %v2445_v22  ;;  %1757 = vrcp.f32 %v2496_v43  ;;  %v634_v10 = vadd.f32 %v501_v55, %v2007_v15  ;;  %v566_v2 = vpop.f32.mrf.mxu2  ;;  %v615_v38 = vpop.f32.mrf.mxu3 }
 0x14b   :  { %v1175_v60 = vmul.f32 %v2477_v6, %v1174_v28  ;;  %v1234_v52 = vadd.f32 0.0036580483, %v1233_v7  ;;  %v1245_v62 = vadd.f32 0.014752088, %v1244_v44  ;;  %v1271_v29 = vmul.f32 2.1237322e-06, %v2501_v0 }
 0x14c   :  { %v1183_v16 = vand.u32 2147483648, %v2445_v22  ;;  %v1199_v51 = vmul.f32 %v1198_v41, %v2393_v40  ;;  %v1282_v3 = vmul.f32 3.8918573e-05, %v2501_v0  ;;  %v1413_v35 = vmul.f32 %v1397_v54, %v2268_v53  ;;  %v456_v54 = vpop.f32.mrf.mxu0 }
 0x14d   :  { %v1146_v5 = vmul.f32 %v1145_v26, %v1121_v45  ;;  %v1235_v9 = vmul.f32 %v1234_v52, %v2465_v46  ;;  %v1246_v17 = vmul.f32 %v1245_v62, %v2465_v46  ;;  %v1272_v36 = vadd.f32 0.00028619796, %v1271_v29  ;;  %v505_v26 = vpop.f32.mrf.mxu1 }
 0x14e   :  { %vm1178_vm9 = vweird.f32 %v2477_v6  ;;  %vm2517_vm10 = vcmp.eq.f32.partialorder %v1181_v58, 8.507059e+37  ;;  %v1283_v8 = vadd.f32 0.001143296, %v1282_v3  ;;  %v1429_v4 = vmul.f32 %v1413_v35, %v634_v10 }
 0x14f   :  { %v614_v63 = vadd.f32 %v613_v50, %v564_v21  ;;  %v1176_v40 = vadd.f32 %v2477_v6, %v1175_v60  ;;  %v1236_v24 = vadd.f32 0.05243302, %v1235_v9  ;;  %v1247_v23 = vadd.f32 0.112945676, %v1246_v17  ;;  %vm2535_vm12 = vmor %vm1177_vm8, %vm1178_vm9 }
 0x150   :  { %v1273_v53 = vmul.f32 %v1272_v36, %v2501_v0  ;;  %v1758_v45 = vpop.eup %1757  ;;  %v1184_v57 = vor.u32 1.1754944e-38, %v1183_v16  ;;  %v1200_v25 = vadd.f32 1.1283791, %v1199_v51  ;;  %v1284_v1 = vmul.f32 %v1283_v8, %v2501_v0  ;;  %1445 = vst [vmem:[#allocation9 + $0x40] sm:$0xff] %v1429_v4 }
 0x151   :  { %v2525_v20 = vadd.f32 %v614_v63, %v1913_v18  ;;  %v1213_v13 = vmul.f32 %v1758_v45, %v2496_v43  ;;  %vm1217_vm11 = vweird.f32 %v2496_v43  ;;  %v1221_v42 = vand.u32 2147483647, %v2496_v43 }
 0x152   :  { %v1237_v55 = vmul.f32 %v1236_v24, %v2465_v46  ;;  %v1248_v47 = vmul.f32 %v1247_v23, %v2465_v46  ;;  %v1274_v32 = vadd.f32 0.0036580483, %v1273_v53  ;;  %v1285_v34 = vadd.f32 0.014752088, %v1284_v1 }
 0x153   :  { %v503_v37 = vadd.f32 %v502_v30, %v453_v11  ;;  %v1180_v56 = vsel %vm2535_vm12, %v2477_v6, %v1176_v40  ;;  %v1214_v41 = vsub.f32 1.0, %v1213_v13  ;;  %v2544_v7 = vmul.f32 0.70710677, %v2525_v20 }
 0x154   :  { %v1674_v22 = vclamps-f32 %v1146_v5, 1.0  ;;  %v1238_v44 = vadd.f32 0.18741608, %v1237_v55  ;;  %v1249_v21 = vadd.f32 0.4994258, %v1248_v47  ;;  %v1275_v50 = vmul.f32 %v1274_v32, %v2501_v0 }
 0x155   :  { %v1286_v28 = vmul.f32 %v1285_v34, %v2501_v0  ;;  %v1215_v58 = vmul.f32 %v1758_v45, %v1214_v41  ;;  %v1309_v10 = vmul.f32 %v2544_v7, %v2544_v7  ;;  %v616_v30 = vadd.f32 %v615_v38, %v566_v2  ;;  %v507_v47 = vpop.f32.mrf.mxu1 }
 0x156   :  { %v1398_v11 = vadd.f32 1.0, %v1674_v22  ;;  %vm1218_vm13 = vweird.f32 %v1758_v45  ;;  %v1250_v6 = vmul.f32 %v1249_v21, %v2465_v46  ;;  %v1276_v60 = vadd.f32 0.05243302, %v1275_v50 }
 0x157   :  { %v1287_v52 = vadd.f32 0.112945676, %v1286_v28  ;;  %v1185_v62 = vsel %vm2517_vm10, %v1184_v57, %v1180_v56  ;;  %v1216_v29 = vadd.f32 %v1758_v45, %v1215_v58  ;;  %v1223_v16 = vand.u32 2147483648, %v2496_v43  ;;  %vm2563_vm14 = vmor %vm1217_vm11, %vm1218_vm13 }
 0x158   :  { %v2554_v51 = vmin.f32 %v1309_v10, 16.0  ;;  %v2556_v3 = vadd.f32 1.0, %v1250_v6  ;;  %v1277_v35 = vmul.f32 %v1276_v60, %v2501_v0  ;;  %v1414_v9 = vmul.f32 %v1398_v11, %v2335_v33 }
 0x159   :  { %v1288_v5 = vmul.f32 %v1287_v52, %v2501_v0  ;;  %v1239_v36 = vmul.f32 %v1238_v44, %v2465_v46  ;;  %v2571_v4 = vadd.f32 %v616_v30, %v1913_v18  ;;  %v1186_v63 = vmul.f32 %v1185_v62, %v2490_v27 }
 0x15a   :  { %v1311_v49 = vmul.f32 2.1237322e-06, %v2554_v51  ;;  %v1322_v8 = vmul.f32 3.8918573e-05, %v2554_v51  ;;  %v1220_v33 = vsel %vm2563_vm14, %v1758_v45, %v1216_v29  ;;  %1759 = vrcp.f32 %v2556_v3 }
 0x15b   :  { %v636_v43 = vadd.f32 %v503_v37, %v2007_v15  ;;  %v1201_v40 = vmul.f32 %v1200_v25, %v2366_v14  ;;  %vm1222_vm15 = vcmp.eq.f32.partialorder %v1221_v42, 8.507059e+37  ;;  %v1224_v46 = vor.u32 1.1754944e-38, %v1223_v16  ;;  %v458_v42 = vpop.f32.mrf.mxu0 }
 0x15c   :  { %v1289_v24 = vadd.f32 0.4994258, %v1288_v5  ;;  %v1278_v23 = vadd.f32 0.18741608, %v1277_v35  ;;  %v1312_v53 = vadd.f32 0.00028619796, %v1311_v49  ;;  %v506_v14 = vadd.f32 %v505_v26, %v456_v54 }
 0x15d   :  { %v1323_v57 = vadd.f32 0.001143296, %v1322_v8  ;;  %v1430_v1 = vmul.f32 %v1414_v9, %v636_v43  ;;  %v1225_v18 = vsel %vm1222_vm15, %v1224_v46, %v1220_v33  ;;  %v1240_v13 = vadd.f32 1.1283791, %v1239_v36 }
 0x15e   :  { %v1290_v27 = vmul.f32 %v1289_v24, %v2501_v0  ;;  %v2581_v55 = vmul.f32 0.70710677, %v2571_v4  ;;  %v1313_v45 = vmul.f32 %v1312_v53, %v2554_v51  ;;  %v1675_v25 = vclamps-f32 %v1186_v63, 1.0  ;;  %v510_v24 = vpop.f32.mrf.mxu1 }
 0x15f   :  { %v1324_v31 = vmul.f32 %v1323_v57, %v2554_v51  ;;  %1446 = vst [vmem:[#allocation9 + $0x48] sm:$0xff] %v1430_v1  ;;  %v1261_v32 = vand.u32 2147483647, %v2556_v3  ;;  %v1263_v34 = vand.u32 2147483648, %v2556_v3  ;;  %v1279_v56 = vmul.f32 %v1278_v23, %v2501_v0 }
 0x160   :  { %v2587_v37 = vadd.f32 1.0, %v1290_v27  ;;  %v1349_v2 = vmul.f32 %v2581_v55, %v2581_v55  ;;  %v1760_v38 = vpop.eup %1759  ;;  %v1314_v41 = vadd.f32 0.0036580483, %v1313_v45  ;;  %v1399_v44 = vadd.f32 1.0, %v1675_v25 }
 0x161   :  { %v1325_v22 = vadd.f32 0.014752088, %v1324_v31  ;;  %v728_v21 = vmul.f32 0.5, %v2346_v19  ;;  %v1241_v50 = vmul.f32 %v1240_v13, %v2439_v61  ;;  %v1253_v28 = vmul.f32 %v1760_v38, %v2556_v3 }
 0x162   :  { %1761 = vrcp.f32 %v2587_v37  ;;  %v1226_v54 = vmul.f32 %v1225_v18, %v1201_v40  ;;  %vm1257_vm0 = vweird.f32 %v2556_v3  ;;  %v1315_v26 = vmul.f32 %v1314_v41, %v2554_v51 }
 0x163   :  { %v638_v58 = vadd.f32 %v506_v14, %v2007_v15  ;;  %v1254_v10 = vsub.f32 1.0, %v1253_v28  ;;  %v1326_v0 = vmul.f32 %v1325_v22, %v2554_v51  ;;  %v2600_v11 = vmin.f32 %v1349_v2, 16.0  ;;  %v461_v46 = vpop.f32.mrf.mxu0 }
 0x164   :  { %v1415_v19 = vmul.f32 %v1399_v44, %v2372_v39  ;;  %vm1258_vm1 = vweird.f32 %v1760_v38  ;;  %vm2603_vm2 = vcmp.eq.f32.partialorder %v1261_v32, 8.507059e+37  ;;  %v1264_v30 = vor.u32 1.1754944e-38, %v1263_v34 }
 0x165   :  { %v1280_v6 = vadd.f32 1.1283791, %v1279_v56  ;;  %v1255_v60 = vmul.f32 %v1760_v38, %v1254_v10  ;;  %v1327_v52 = vadd.f32 0.112945676, %v1326_v0  ;;  %v1351_v62 = vmul.f32 2.1237322e-06, %v2600_v11  ;;  %vm1259_vm3 = vmor %vm1257_vm0, %vm1258_vm1 }
 0x166   :  { %v1362_v29 = vmul.f32 3.8918573e-05, %v2600_v11  ;;  %v1316_v16 = vadd.f32 0.05243302, %v1315_v26  ;;  %v1431_v35 = vmul.f32 %v1415_v19, %v638_v58  ;;  %v508_v5 = vadd.f32 %v507_v47, %v458_v42 }
 0x167   :  { %v1676_v9 = vclamps-f32 %v1226_v54, 1.0  ;;  %v1256_v36 = vadd.f32 %v1760_v38, %v1255_v60  ;;  %v1328_v39 = vmul.f32 %v1327_v52, %v2554_v51  ;;  %v1352_v49 = vadd.f32 0.00028619796, %v1351_v62 }
 0x168   :  { %v1762_v17 = vpop.eup %1761  ;;  %v1363_v8 = vadd.f32 0.001143296, %v1362_v29  ;;  %v1301_v33 = vand.u32 2147483647, %v2587_v37  ;;  %v1303_v43 = vand.u32 2147483648, %v2587_v37  ;;  %1447 = vst [vmem:[#allocation9 + $0x50] sm:$0xff] %v1431_v35  ;;  %v640_v13 = vadd.f32 %v508_v5, %v2007_v15 }
 0x169   :  { %v1293_v63 = vmul.f32 %v1762_v17, %v2587_v37  ;;  %v1400_v40 = vadd.f32 1.0, %v1676_v9  ;;  %v1260_v23 = vsel %vm1259_vm3, %v1760_v38, %v1256_v36  ;;  %v1329_v53 = vadd.f32 0.4994258, %v1328_v39 }
 0x16a   :  { %v1353_v57 = vmul.f32 %v1352_v49, %v2600_v11  ;;  %v1364_v1 = vmul.f32 %v1363_v8, %v2600_v11  ;;  %v1265_v3 = vsel %vm2603_vm2, %v1264_v30, %v1260_v23  ;;  %v1317_v31 = vmul.f32 %v1316_v16, %v2554_v51 }
 0x16b   :  { %v1294_v18 = vsub.f32 1.0, %v1293_v63  ;;  %v1416_v27 = vmul.f32 %v1400_v40, %v728_v21  ;;  %v1266_v45 = vmul.f32 %v1265_v3, %v1241_v50  ;;  %v1330_v14 = vmul.f32 %v1329_v53, %v2554_v51  ;;  %v463_v61 = vpop.f32.mrf.mxu0 }
 0x16c   :  { %v1365_v25 = vadd.f32 0.014752088, %v1364_v1  ;;  %vm1298_vm4 = vweird.f32 %v1762_v17  ;;  %v511_v32 = vadd.f32 %v510_v24, %v461_v46  ;;  %v1354_v2 = vadd.f32 0.0036580483, %v1353_v57 }
 0x16d   :  { %v1295_v42 = vmul.f32 %v1762_v17, %v1294_v18  ;;  %v1432_v47 = vmul.f32 %v1416_v27, %v640_v13  ;;  %v1331_v34 = vadd.f32 1.0, %v1330_v14  ;;  %v1677_v56 = vclamps-f32 %v1266_v45, 1.0 }
 0x16e   :  { %v1366_v38 = vmul.f32 %v1365_v25, %v2600_v11  ;;  %v729_v41 = vmul.f32 0.5, %v2414_v59  ;;  %v1281_v22 = vmul.f32 %v1280_v6, %v2475_v48  ;;  %vm1297_vm5 = vweird.f32 %v2587_v37  ;;  %v512_v37 = vpop.f32.mrf.mxu1 }
 0x16f   :  { %v1296_v44 = vadd.f32 %v1762_v17, %v1295_v42  ;;  %1448 = vst [vmem:[#allocation9 + $0x58] sm:$0xff] %v1432_v47  ;;  %vm1299_vm6 = vmor %vm1297_vm5, %vm1298_vm4  ;;  %vm1302_vm7 = vcmp.eq.f32.partialorder %v1301_v33, 8.507059e+37  ;;  %v1304_v21 = vor.u32 1.1754944e-38, %v1303_v43  ;;  %v1318_v50 = vadd.f32 0.18741608, %v1317_v31 }
 0x170   :  { %1763 = vrcp.f32 %v1331_v34  ;;  %v1367_v54 = vadd.f32 0.112945676, %v1366_v38  ;;  %v642_v26 = vadd.f32 %v511_v32, %v2007_v15  ;;  %v1401_v58 = vadd.f32 1.0, %v1677_v56 }
 0x171   :  { %v1300_v28 = vsel %vm1299_vm6, %v1762_v17, %v1296_v44  ;;  %v1355_v0 = vmul.f32 %v1354_v2, %v2600_v11  ;;  %v1319_v30 = vmul.f32 %v1318_v50, %v2554_v51  ;;  %v513_v16 = vadd.f32 %v512_v37, %v463_v61 }
 0x172   :  { %v1305_v10 = vsel %vm1302_vm7, %v1304_v21, %v1300_v28  ;;  %v1368_v48 = vmul.f32 %v1367_v54, %v2600_v11  ;;  %v1417_v19 = vmul.f32 %v1401_v58, %v729_v41  ;;  %v730_v9 = vmul.f32 0.5, %v2459_v12 }
 0x173   :  { %v1306_v59 = vmul.f32 %v1305_v10, %v1281_v22  ;;  %v1356_v29 = vadd.f32 0.05243302, %v1355_v0  ;;  %v1320_v36 = vadd.f32 1.1283791, %v1319_v30  ;;  %v1343_v8 = vand.u32 2147483648, %v1331_v34  ;;  %v466_v3 = vpop.f32.mrf.mxu0 }
 0x174   :  { %v1369_v6 = vadd.f32 0.4994258, %v1368_v48  ;;  %v1433_v60 = vmul.f32 %v1417_v19, %v642_v26  ;;  %v644_v51 = vadd.f32 %v513_v16, %v2007_v15  ;;  %v1341_v40 = vand.u32 2147483647, %v1331_v34 }
 0x175   :  { %v1678_v52 = vclamps-f32 %v1306_v59, 1.0  ;;  %v1357_v63 = vmul.f32 %v1356_v29, %v2600_v11  ;;  %vm1337_vm9 = vweird.f32 %v1331_v34  ;;  %v1344_v23 = vor.u32 1.1754944e-38, %v1343_v8 }
 0x176   :  { %v1764_v62 = vpop.eup %1763  ;;  %v1370_v5 = vmul.f32 %v1369_v6, %v2600_v11  ;;  %1449 = vst [vmem:[#allocation9 + $0x60] sm:$0xff] %v1433_v60  ;;  %v1321_v53 = vmul.f32 %v1320_v36, %v2544_v7  ;;  %vm1342_vm11 = vcmp.eq.f32.partialorder %v1341_v40, 8.507059e+37  ;;  %v515_v18 = vpop.f32.mrf.mxu1  ;;  %v731_v47 = vmul.f32 0.5, %v2525_v20 }
 0x177   :  { %v1333_v35 = vmul.f32 %v1764_v62, %v1331_v34  ;;  %v1402_v17 = vadd.f32 1.0, %v1678_v52  ;;  %vm1338_vm8 = vweird.f32 %v1764_v62  ;;  %v1358_v12 = vadd.f32 0.18741608, %v1357_v63 }
 0x178   :  { %v1371_v49 = vadd.f32 1.0, %v1370_v5  ;;  %vm1339_vm10 = vmor %vm1337_vm9, %vm1338_vm8  ;;  %v516_v45 = vadd.f32 %v515_v18, %v466_v3  ;;  %v732_v0 = vmul.f32 0.5, %v2571_v4 }
 0x179   :  { %v1334_v39 = vsub.f32 1.0, %v1333_v35  ;;  %v1418_v33 = vmul.f32 %v1402_v17, %v730_v9  ;;  %v1359_v31 = vmul.f32 %v1358_v12, %v2600_v11 }
 0x17a   :  { %1765 = vrcp.f32 %v1371_v49  ;;  %v1383_v32 = vand.u32 2147483648, %v1371_v49  ;;  %v646_v34 = vadd.f32 %v516_v45, %v2007_v15  ;;  %v1381_v56 = vand.u32 2147483647, %v1371_v49 }
 0x17b   :  { %v1335_v43 = vmul.f32 %v1764_v62, %v1334_v39  ;;  %v1434_v46 = vmul.f32 %v1418_v33, %v644_v51  ;;  %v1360_v7 = vadd.f32 1.1283791, %v1359_v31  ;;  %vm1377_vm13 = vweird.f32 %v1371_v49  ;;  %v468_v20 = vpop.f32.mrf.mxu0 }
 0x17c   :  { %v1384_v44 = vor.u32 1.1754944e-38, %v1383_v32  ;;  %vm1382_vm15 = vcmp.eq.f32.partialorder %v1381_v56, 8.507059e+37 }
 0x17d   :  { %v1336_v24 = vadd.f32 %v1764_v62, %v1335_v43  ;;  %1450 = vst [vmem:[#allocation9 + $0x68] sm:$0xff] %v1434_v46  ;;  %v1361_v11 = vmul.f32 %v1360_v7, %v2581_v55 }
 0x17e   :  { %v517_v54 = vpop.f32.mrf.mxu1 }
 0x17f   :  { %v1340_v57 = vsel %vm1339_vm10, %v1764_v62, %v1336_v24  ;;  %v518_v58 = vadd.f32 %v517_v54, %v468_v20 }
 0x180   :  { %v1345_v1 = vsel %vm1342_vm11, %v1344_v23, %v1340_v57  ;;  %v1766_v13 = vpop.eup %1765 }
 0x181   :  { %v1346_v27 = vmul.f32 %v1345_v1, %v1321_v53  ;;  %v1373_v14 = vmul.f32 %v1766_v13, %v1371_v49  ;;  %vm1378_vm12 = vweird.f32 %v1766_v13  ;;  %v648_v55 = vadd.f32 %v518_v58, %v2007_v15 }
 0x182   :  { %vm1379_vm14 = vmor %vm1377_vm13, %vm1378_vm12 }
 0x183   :  { %v1679_v25 = vclamps-f32 %v1346_v27, 1.0  ;;  %v1374_v42 = vsub.f32 1.0, %v1373_v14 }
 0x185   :  { %v1403_v2 = vadd.f32 1.0, %v1679_v25  ;;  %v1375_v38 = vmul.f32 %v1766_v13, %v1374_v42 }
 0x187   :  { %v1419_v41 = vmul.f32 %v1403_v2, %v731_v47  ;;  %v1376_v22 = vadd.f32 %v1766_v13, %v1375_v38 }
 0x189   :  { %v1435_v21 = vmul.f32 %v1419_v41, %v646_v34  ;;  %v1380_v50 = vsel %vm1379_vm14, %v1766_v13, %v1376_v22 }
 0x18a   :  { %v1385_v28 = vsel %vm1382_vm15, %v1384_v44, %v1380_v50 }
 0x18b   :  { %1451 = vst [vmem:[#allocation9 + $0x70] sm:$0xff] %v1435_v21  ;;  %v1386_v26 = vmul.f32 %v1385_v28, %v1361_v11 }
 0x18d   :  { %v1680_v10 = vclamps-f32 %v1386_v26, 1.0 }
 0x18f   :  { %v1404_v59 = vadd.f32 1.0, %v1680_v10 }
 0x191   :  { %v1420_v48 = vmul.f32 %v1404_v59, %v732_v0 }
 0x193   :  { %v1436_v19 = vmul.f32 %v1420_v48, %v648_v55 }
 0x195   :  { %1452 = vst [vmem:[#allocation9 + $0x78] sm:$0xff] %v1436_v19 }
 0x196   :  { %1465 = dma.vmem_to_hbm [thread:$0]  %s1458_s27, 2048, %s1460_s30, [#allocation5], %s1870_s20, %s1870_s20, %s1871_s21  }
 0x197   :  { %1867 = dma.done.wait [#allocation5], 2048  }
 0x198   :  { %1868 = vsyncadd [#allocation5], 4294965248 }
 0x199   :  { %1470 = vsyncpa [#allocation4], 1 }
 0x19a   :  { %1471 = vsyncpa [#allocation7], 1 }
 0x19b   :  { %1472 = vsyncpa [#allocation5], 1 }

</bundles_post_ra>
